<compile_context>
chip_gen: v7x
topology: tpu7x:2x2x1
jax: 0.10.0
libtpu: 0.0.40
codegen_flags: <defaults>
</compile_context>

<pallas_src>
import functools

import jax
import jax.numpy as jnp
from jax.experimental import pallas as pl
from jax.experimental.pallas import tpu as pltpu  # noqa: F401  (per template)


# ----------------------------------------------------------------------------
# Fused Pallas kernel: the whole HGAT forward for the whole batch.
# ----------------------------------------------------------------------------
def _hgat_kernel(x_ref, p0_ref, mbias_ref,
                 wkv_ref, bkv_ref, wq_ref, bq_ref, wskc_ref,
                 out_ref, *, batch, n_layers, hidden):
    H = hidden

    def ra(qs, kv, mb, idx):
        # key/value side, one lane-packed matmul -> [ v | v @ wgo ]   (Nk, H+1)
        kvproj = (jnp.dot(kv, wkv_ref[idx], preferred_element_type=jnp.float32)
                  + bkv_ref[idx])
        # query side, one packed matmul -> [ sq+const | p@(wgo+wgp)+bg ] (Nq, 2)
        qproj = (jnp.dot(qs, wq_ref[idx], preferred_element_type=jnp.float32)
                 + bq_ref[idx])
        # key-side score term directly as a row (1, Nk): avoids a transpose.
        skrow = jax.lax.dot_general(wskc_ref[idx], kv,
                                    (((0,), (1,)), ((), ())),
                                    preferred_element_type=jnp.float32)
        # score[i, j] = q_i @ wsq + k_j @ wsk + bs   (biases folded in wrapper)
        score = qproj[:, 0:1] + skrow                                 # (Nq, Nk)
        if mb is not None:
            score = score + mb                                        # (1, Nk)
        score = score - jnp.max(score, axis=-1, keepdims=True)
        e = jnp.exp(score)
        attn = e * pl.reciprocal(jnp.sum(e, axis=-1, keepdims=True), approx=True)
        ov = jnp.dot(attn, kvproj, preferred_element_type=jnp.float32)  # (Nq, H+1)
        out = ov[:, 0:H] + qs                                         # attn@v + p
        g = jax.nn.sigmoid(ov[:, H:H + 1] + qproj[:, 1:2])            # gate
        return g * out + (1.0 - g) * qs

    for b in range(batch):                       # tiny batch: static unroll
        xb = x_ref[b]                            # (L, H) token features
        pb = p0_ref[...]                         # (C, H) shared class features
        mb = mbias_ref[b]                        # (1, L) additive mask bias
        for l in range(n_layers):
            xb = ra(xb, pb, None, 2 * l) + xb        # ra1(x, p)       + resid
            pb = ra(pb, xb, mb, 2 * l + 1) + pb      # ra2(p, x, mask) + resid
        out_ref[b] = xb


# ----------------------------------------------------------------------------
# Wrapper: exact algebraic weight packing + single pallas_call.
# ----------------------------------------------------------------------------
def _pack_ra(raw):
    (wq, bq, wk, bk, wv, bv, wsq, wsk, bs, wgo, wgp, bg) = raw
    wkv = jnp.concatenate([wv, wv @ wgo], axis=1)                    # (H, H+1)
    bkv = jnp.concatenate([bv, bv @ wgo], axis=1)                    # (1, H+1)
    wq2 = jnp.concatenate([wq @ wsq, wgo + wgp], axis=1)             # (H, 2)
    bq2 = jnp.concatenate([bq @ wsq + bk @ wsk + bs, bg], axis=1)    # (1, 2)
    wskc = wk @ wsk                                                  # (H, 1)
    return wkv, bkv, wq2, bq2, wskc


def hgat_forward(x, mask, params):
    B, L, H = x.shape
    layers = params["layers"]
    n_layers = len(layers)

    # p = relation(embedding(arange(C)))  (arange gather == the whole table).
    p0 = params["embedding"] @ params["relation_w"] + params["relation_b"]  # (C,H)

    # Additive mask bias over the token (key) axis, robust to non-exact masks.
    mbias = jnp.where(mask > 0.5, 0.0, -1000000000.0).astype(jnp.float32)
    mbias = mbias.reshape(B, 1, L)

    packed = [_pack_ra(layers[l][name]) for l in range(n_layers)
              for name in ("ra1", "ra2")]
    wkv_all = jnp.stack([t[0] for t in packed])   # (2*n_layers, H, H+1)
    bkv_all = jnp.stack([t[1] for t in packed])   # (2*n_layers, 1, H+1)
    wq_all = jnp.stack([t[2] for t in packed])    # (2*n_layers, H, 2)
    bq_all = jnp.stack([t[3] for t in packed])    # (2*n_layers, 1, 2)
    wskc_all = jnp.stack([t[4] for t in packed])  # (2*n_layers, H, 1)

    kernel = functools.partial(_hgat_kernel, batch=B, n_layers=n_layers, hidden=H)
    return pl.pallas_call(
        kernel,
        out_shape=jax.ShapeDtypeStruct((B, L, H), jnp.float32),
    )(x, p0, mbias, wkv_all, bkv_all, wq_all, bq_all, wskc_all)


# ----------------------------------------------------------------------------
# Pure-JAX reference (mirrors the PyTorch module exactly) for the self-check.
# ----------------------------------------------------------------------------
def _ra_ref(p, x, mask, raw):
    (wq, bq, wk, bk, wv, bv, wsq, wsk, bs, wgo, wgp, bg) = raw
    q = p @ wq + bq
    k = x @ wk + bk
    v = x @ wv + bv
    score = (q @ wsq) + jnp.swapaxes(k @ wsk, -1, -2) + bs[0, 0]
    if mask is not None:
        score = jnp.where(mask[:, None, :] == 0.0, -1000000000.0, score)
    score = jax.nn.softmax(score, axis=-1)
    out = jnp.einsum('bcl,bld->bcd', score, v) + p
    g = jax.nn.sigmoid(out @ wgo + p @ wgp + bg[0, 0])
    return g * out + (1.0 - g) * p


def hgat_forward_ref(x, mask, params):
    B = x.shape[0]
    p0 = params["embedding"] @ params["relation_w"] + params["relation_b"]
    p = jnp.broadcast_to(p0[None], (B,) + p0.shape)
    for layer in params["layers"]:
        x = _ra_ref(x, p, None, layer["ra1"]) + x
        p = _ra_ref(p, x, mask, layer["ra2"]) + p
    return x


# ----------------------------------------------------------------------------
# Deterministic synthetic parameter init (matches the nn.Module shapes).
# ----------------------------------------------------------------------------
def _init_linear(key, d_in, d_out, scale=0.1):
    kw, kb = jax.random.split(key)
    w = jax.random.normal(kw, (d_in, d_out), jnp.float32) * scale
    b = jax.random.normal(kb, (1, d_out), jnp.float32) * scale
    return w, b


def _init_ra(key, H):
    keys = jax.random.split(key, 7)
    wq, bq = _init_linear(keys[0], H, H)
    wk, bk = _init_linear(keys[1], H, H)
    wv, bv = _init_linear(keys[2], H, H)
    wsq, _ = _init_linear(keys[3], H, 1)      # score Linear(2H,1), q-half
    wsk, bs = _init_linear(keys[4], H, 1)     # score Linear(2H,1), k-half + bias
    wgo, _ = _init_linear(keys[5], H, 1)      # gate Linear(2H,1), out-half
    wgp, bg = _init_linear(keys[6], H, 1)     # gate Linear(2H,1), p-half + bias
    return (wq, bq, wk, bk, wv, bv, wsq, wsk, bs, wgo, wgp, bg)


def init_hgat_params(key, class_nums, hidden_size, hgat_layers):
    keys = jax.random.split(key, 2 + hgat_layers)
    emb = jax.random.normal(keys[0], (class_nums, hidden_size), jnp.float32) * 0.1
    wr, br = _init_linear(keys[1], hidden_size, hidden_size)
    layers = []
    for i in range(hgat_layers):
        k1, k2 = jax.random.split(keys[2 + i])
        layers.append({"ra1": _init_ra(k1, hidden_size),
                       "ra2": _init_ra(k2, hidden_size)})
    return {"embedding": emb, "relation_w": wr, "relation_b": br, "layers": layers}


if __name__ == "__main__":
    # config: class_nums=4, hidden_size=32, hgat_layers=2
    B, L, C, H, N_LAYERS = 2, 8, 4, 32, 2

    key = jax.random.PRNGKey(0)
    kx, kp = jax.random.split(key)
    x = jax.random.normal(kx, (B, L, H), jnp.float32)
    # float {0,1} token mask; keep first 6 tokens of each sequence
    mask = (jnp.arange(L)[None, :] < 6).astype(jnp.float32)
    mask = jnp.broadcast_to(mask, (B, L))

    params = init_hgat_params(kp, C, H, N_LAYERS)

    out = jax.jit(hgat_forward)(x, mask, params)
    out = jax.block_until_ready(out)

    out_ref = hgat_forward_ref(x, mask, params)
    out_ref = jax.block_until_ready(out_ref)

    assert out.shape == (B, L, H)
    # Tolerance covers the approximate EUP reciprocal in the softmax; real
    # structural bugs would be O(0.1) or larger.
    err = float(jnp.max(jnp.abs(out - out_ref)))
    assert err < 5e-3, err
    print("KERNEL_OK")
</pallas_src>

<mosaic_0001>
module attributes {stable_mosaic.version = 11 : i64} {
  func.func @_hgat_kernel(%arg0: memref<2x8x32xf32, #tpu.memory_space<vmem>>, %arg1: memref<4x32xf32, #tpu.memory_space<vmem>>, %arg2: memref<2x1x8xf32, #tpu.memory_space<vmem>>, %arg3: memref<4x32x33xf32, #tpu.memory_space<vmem>>, %arg4: memref<4x1x33xf32, #tpu.memory_space<vmem>>, %arg5: memref<4x32x2xf32, #tpu.memory_space<vmem>>, %arg6: memref<4x1x2xf32, #tpu.memory_space<vmem>>, %arg7: memref<4x32x1xf32, #tpu.memory_space<vmem>>, %arg8: memref<2x8x32xf32, #tpu.memory_space<vmem>>) attributes {dimension_semantics = [], scalar_prefetch = 0 : i64, scratch_operands = 0 : i64, tpu.core_type = #tpu.core_type<tc>} {
    %c0 = arith.constant 0 : index
    %c0_0 = arith.constant 0 : index
    %c0_1 = arith.constant 0 : index
    %0 = vector.load %arg0[%c0, %c0_0, %c0_1] : memref<2x8x32xf32, #tpu.memory_space<vmem>>, vector<1x8x32xf32>
    %1 = vector.shape_cast %0 : vector<1x8x32xf32> to vector<8x32xf32>
    %c0_2 = arith.constant 0 : index
    %c0_3 = arith.constant 0 : index
    %2 = vector.load %arg1[%c0_2, %c0_3] : memref<4x32xf32, #tpu.memory_space<vmem>>, vector<4x32xf32>
    %c0_4 = arith.constant 0 : index
    %c0_5 = arith.constant 0 : index
    %c0_6 = arith.constant 0 : index
    %3 = vector.load %arg2[%c0_4, %c0_5, %c0_6] : memref<2x1x8xf32, #tpu.memory_space<vmem>>, vector<1x1x8xf32>
    %4 = vector.shape_cast %3 : vector<1x1x8xf32> to vector<1x8xf32>
    %c0_7 = arith.constant 0 : index
    %c0_8 = arith.constant 0 : index
    %c0_9 = arith.constant 0 : index
    %5 = vector.load %arg3[%c0_7, %c0_8, %c0_9] : memref<4x32x33xf32, #tpu.memory_space<vmem>>, vector<1x32x33xf32>
    %6 = vector.shape_cast %5 : vector<1x32x33xf32> to vector<32x33xf32>
    %cst = arith.constant dense<0.000000e+00> : vector<4x33xf32>
    %7 = tpu.matmul %2, %6, %cst {dimension_numbers = #tpu.dot_dimension_numbers<[1], [0], [0], [1], [0, 0, 1, 1], [], []>} : vector<4x32xf32>, vector<32x33xf32>, vector<4x33xf32> -> vector<4x33xf32>
    %c0_10 = arith.constant 0 : index
    %c0_11 = arith.constant 0 : index
    %c0_12 = arith.constant 0 : index
    %8 = vector.load %arg4[%c0_10, %c0_11, %c0_12] : memref<4x1x33xf32, #tpu.memory_space<vmem>>, vector<1x1x33xf32>
    %9 = vector.shape_cast %8 : vector<1x1x33xf32> to vector<1x33xf32>
    %10 = vector.broadcast %9 : vector<1x33xf32> to vector<4x33xf32>
    %11 = arith.addf %7, %10 : vector<4x33xf32>
    %c0_13 = arith.constant 0 : index
    %c0_14 = arith.constant 0 : index
    %c0_15 = arith.constant 0 : index
    %12 = vector.load %arg5[%c0_13, %c0_14, %c0_15] : memref<4x32x2xf32, #tpu.memory_space<vmem>>, vector<1x32x2xf32>
    %13 = vector.shape_cast %12 : vector<1x32x2xf32> to vector<32x2xf32>
    %cst_16 = arith.constant dense<0.000000e+00> : vector<8x2xf32>
    %14 = tpu.matmul %1, %13, %cst_16 {dimension_numbers = #tpu.dot_dimension_numbers<[1], [0], [0], [1], [0, 0, 1, 1], [], []>} : vector<8x32xf32>, vector<32x2xf32>, vector<8x2xf32> -> vector<8x2xf32>
    %c0_17 = arith.constant 0 : index
    %c0_18 = arith.constant 0 : index
    %c0_19 = arith.constant 0 : index
    %15 = vector.load %arg6[%c0_17, %c0_18, %c0_19] : memref<4x1x2xf32, #tpu.memory_space<vmem>>, vector<1x1x2xf32>
    %16 = vector.shape_cast %15 : vector<1x1x2xf32> to vector<1x2xf32>
    %17 = vector.broadcast %16 : vector<1x2xf32> to vector<8x2xf32>
    %18 = arith.addf %14, %17 : vector<8x2xf32>
    %c0_20 = arith.constant 0 : index
    %c0_21 = arith.constant 0 : index
    %c0_22 = arith.constant 0 : index
    %19 = vector.load %arg7[%c0_20, %c0_21, %c0_22] : memref<4x32x1xf32, #tpu.memory_space<vmem>>, vector<1x32x1xf32>
    %20 = vector.shape_cast %19 : vector<1x32x1xf32> to vector<32x1xf32>
    %cst_23 = arith.constant dense<0.000000e+00> : vector<1x4xf32>
    %21 = tpu.matmul %20, %2, %cst_23 {dimension_numbers = #tpu.dot_dimension_numbers<[0], [1], [1], [0], [0, 1, 1, 0], [], []>} : vector<32x1xf32>, vector<4x32xf32>, vector<1x4xf32> -> vector<1x4xf32>
    %22 = vector.extract_strided_slice %18 {offsets = [0, 0], sizes = [8, 1], strides = [1, 1]} : vector<8x2xf32> to vector<8x1xf32>
    %23 = vector.broadcast %22 : vector<8x1xf32> to vector<8x4xf32>
    %24 = vector.broadcast %21 : vector<1x4xf32> to vector<8x4xf32>
    %25 = arith.addf %23, %24 : vector<8x4xf32>
    %cst_24 = arith.constant dense<0xFF800000> : vector<8xf32>
    %26 = vector.multi_reduction <maximumf>, %25, %cst_24 [1] : vector<8x4xf32> to vector<8xf32>
    %27 = vector.shape_cast %26 : vector<8xf32> to vector<8x1xf32>
    %28 = vector.broadcast %27 : vector<8x1xf32> to vector<8x4xf32>
    %29 = arith.subf %25, %28 : vector<8x4xf32>
    %30 = math.exp %29 : vector<8x4xf32>
    %cst_25 = arith.constant dense<0.000000e+00> : vector<8xf32>
    %31 = vector.multi_reduction <add>, %30, %cst_25 [1] : vector<8x4xf32> to vector<8xf32>
    %32 = vector.shape_cast %31 : vector<8xf32> to vector<8x1xf32>
    %33 = tpu.reciprocal %32 {approx = true} : vector<8x1xf32> -> vector<8x1xf32>
    %34 = vector.broadcast %33 : vector<8x1xf32> to vector<8x4xf32>
    %35 = arith.mulf %30, %34 : vector<8x4xf32>
    %cst_26 = arith.constant dense<0.000000e+00> : vector<8x33xf32>
    %36 = tpu.matmul %35, %11, %cst_26 {dimension_numbers = #tpu.dot_dimension_numbers<[1], [0], [0], [1], [0, 0, 1, 1], [], []>} : vector<8x4xf32>, vector<4x33xf32>, vector<8x33xf32> -> vector<8x33xf32>
    %37 = vector.extract_strided_slice %36 {offsets = [0, 0], sizes = [8, 32], strides = [1, 1]} : vector<8x33xf32> to vector<8x32xf32>
    %38 = arith.addf %37, %1 : vector<8x32xf32>
    %39 = vector.extract_strided_slice %36 {offsets = [0, 32], sizes = [8, 1], strides = [1, 1]} : vector<8x33xf32> to vector<8x1xf32>
    %40 = vector.extract_strided_slice %18 {offsets = [0, 1], sizes = [8, 1], strides = [1, 1]} : vector<8x2xf32> to vector<8x1xf32>
    %41 = arith.addf %39, %40 : vector<8x1xf32>
    %42 = arith.negf %41 : vector<8x1xf32>
    %43 = math.exp %42 : vector<8x1xf32>
    %cst_27 = arith.constant 1.000000e+00 : f32
    %44 = vector.broadcast %cst_27 : f32 to vector<8x1xf32>
    %45 = arith.addf %44, %43 : vector<8x1xf32>
    %46 = arith.divf %44, %45 : vector<8x1xf32>
    %47 = vector.broadcast %46 : vector<8x1xf32> to vector<8x32xf32>
    %48 = arith.mulf %47, %38 : vector<8x32xf32>
    %cst_28 = arith.constant 1.000000e+00 : f32
    %49 = vector.broadcast %cst_28 : f32 to vector<8x1xf32>
    %50 = arith.subf %49, %46 : vector<8x1xf32>
    %51 = vector.broadcast %50 : vector<8x1xf32> to vector<8x32xf32>
    %52 = arith.mulf %51, %1 : vector<8x32xf32>
    %53 = arith.addf %48, %52 : vector<8x32xf32>
    %54 = arith.addf %53, %1 : vector<8x32xf32>
    %c1 = arith.constant 1 : index
    %c0_29 = arith.constant 0 : index
    %c0_30 = arith.constant 0 : index
    %55 = vector.load %arg3[%c1, %c0_29, %c0_30] : memref<4x32x33xf32, #tpu.memory_space<vmem>>, vector<1x32x33xf32>
    %56 = vector.shape_cast %55 : vector<1x32x33xf32> to vector<32x33xf32>
    %cst_31 = arith.constant dense<0.000000e+00> : vector<8x33xf32>
    %57 = tpu.matmul %54, %56, %cst_31 {dimension_numbers = #tpu.dot_dimension_numbers<[1], [0], [0], [1], [0, 0, 1, 1], [], []>} : vector<8x32xf32>, vector<32x33xf32>, vector<8x33xf32> -> vector<8x33xf32>
    %c1_32 = arith.constant 1 : index
    %c0_33 = arith.constant 0 : index
    %c0_34 = arith.constant 0 : index
    %58 = vector.load %arg4[%c1_32, %c0_33, %c0_34] : memref<4x1x33xf32, #tpu.memory_space<vmem>>, vector<1x1x33xf32>
    %59 = vector.shape_cast %58 : vector<1x1x33xf32> to vector<1x33xf32>
    %60 = vector.broadcast %59 : vector<1x33xf32> to vector<8x33xf32>
    %61 = arith.addf %57, %60 : vector<8x33xf32>
    %c1_35 = arith.constant 1 : index
    %c0_36 = arith.constant 0 : index
    %c0_37 = arith.constant 0 : index
    %62 = vector.load %arg5[%c1_35, %c0_36, %c0_37] : memref<4x32x2xf32, #tpu.memory_space<vmem>>, vector<1x32x2xf32>
    %63 = vector.shape_cast %62 : vector<1x32x2xf32> to vector<32x2xf32>
    %cst_38 = arith.constant dense<0.000000e+00> : vector<4x2xf32>
    %64 = tpu.matmul %2, %63, %cst_38 {dimension_numbers = #tpu.dot_dimension_numbers<[1], [0], [0], [1], [0, 0, 1, 1], [], []>} : vector<4x32xf32>, vector<32x2xf32>, vector<4x2xf32> -> vector<4x2xf32>
    %c1_39 = arith.constant 1 : index
    %c0_40 = arith.constant 0 : index
    %c0_41 = arith.constant 0 : index
    %65 = vector.load %arg6[%c1_39, %c0_40, %c0_41] : memref<4x1x2xf32, #tpu.memory_space<vmem>>, vector<1x1x2xf32>
    %66 = vector.shape_cast %65 : vector<1x1x2xf32> to vector<1x2xf32>
    %67 = vector.broadcast %66 : vector<1x2xf32> to vector<4x2xf32>
    %68 = arith.addf %64, %67 : vector<4x2xf32>
    %c1_42 = arith.constant 1 : index
    %c0_43 = arith.constant 0 : index
    %c0_44 = arith.constant 0 : index
    %69 = vector.load %arg7[%c1_42, %c0_43, %c0_44] : memref<4x32x1xf32, #tpu.memory_space<vmem>>, vector<1x32x1xf32>
    %70 = vector.shape_cast %69 : vector<1x32x1xf32> to vector<32x1xf32>
    %cst_45 = arith.constant dense<0.000000e+00> : vector<1x8xf32>
    %71 = tpu.matmul %70, %54, %cst_45 {dimension_numbers = #tpu.dot_dimension_numbers<[0], [1], [1], [0], [0, 1, 1, 0], [], []>} : vector<32x1xf32>, vector<8x32xf32>, vector<1x8xf32> -> vector<1x8xf32>
    %72 = vector.extract_strided_slice %68 {offsets = [0, 0], sizes = [4, 1], strides = [1, 1]} : vector<4x2xf32> to vector<4x1xf32>
    %73 = vector.broadcast %72 : vector<4x1xf32> to vector<4x8xf32>
    %74 = vector.broadcast %71 : vector<1x8xf32> to vector<4x8xf32>
    %75 = arith.addf %73, %74 : vector<4x8xf32>
    %76 = vector.broadcast %4 : vector<1x8xf32> to vector<4x8xf32>
    %77 = arith.addf %75, %76 : vector<4x8xf32>
    %cst_46 = arith.constant dense<0xFF800000> : vector<4xf32>
    %78 = vector.multi_reduction <maximumf>, %77, %cst_46 [1] : vector<4x8xf32> to vector<4xf32>
    %79 = vector.shape_cast %78 : vector<4xf32> to vector<4x1xf32>
    %80 = vector.broadcast %79 : vector<4x1xf32> to vector<4x8xf32>
    %81 = arith.subf %77, %80 : vector<4x8xf32>
    %82 = math.exp %81 : vector<4x8xf32>
    %cst_47 = arith.constant dense<0.000000e+00> : vector<4xf32>
    %83 = vector.multi_reduction <add>, %82, %cst_47 [1] : vector<4x8xf32> to vector<4xf32>
    %84 = vector.shape_cast %83 : vector<4xf32> to vector<4x1xf32>
    %85 = tpu.reciprocal %84 {approx = true} : vector<4x1xf32> -> vector<4x1xf32>
    %86 = vector.broadcast %85 : vector<4x1xf32> to vector<4x8xf32>
    %87 = arith.mulf %82, %86 : vector<4x8xf32>
    %cst_48 = arith.constant dense<0.000000e+00> : vector<4x33xf32>
    %88 = tpu.matmul %87, %61, %cst_48 {dimension_numbers = #tpu.dot_dimension_numbers<[1], [0], [0], [1], [0, 0, 1, 1], [], []>} : vector<4x8xf32>, vector<8x33xf32>, vector<4x33xf32> -> vector<4x33xf32>
    %89 = vector.extract_strided_slice %88 {offsets = [0, 0], sizes = [4, 32], strides = [1, 1]} : vector<4x33xf32> to vector<4x32xf32>
    %90 = arith.addf %89, %2 : vector<4x32xf32>
    %91 = vector.extract_strided_slice %88 {offsets = [0, 32], sizes = [4, 1], strides = [1, 1]} : vector<4x33xf32> to vector<4x1xf32>
    %92 = vector.extract_strided_slice %68 {offsets = [0, 1], sizes = [4, 1], strides = [1, 1]} : vector<4x2xf32> to vector<4x1xf32>
    %93 = arith.addf %91, %92 : vector<4x1xf32>
    %94 = arith.negf %93 : vector<4x1xf32>
    %95 = math.exp %94 : vector<4x1xf32>
    %cst_49 = arith.constant 1.000000e+00 : f32
    %96 = vector.broadcast %cst_49 : f32 to vector<4x1xf32>
    %97 = arith.addf %96, %95 : vector<4x1xf32>
    %98 = arith.divf %96, %97 : vector<4x1xf32>
    %99 = vector.broadcast %98 : vector<4x1xf32> to vector<4x32xf32>
    %100 = arith.mulf %99, %90 : vector<4x32xf32>
    %cst_50 = arith.constant 1.000000e+00 : f32
    %101 = vector.broadcast %cst_50 : f32 to vector<4x1xf32>
    %102 = arith.subf %101, %98 : vector<4x1xf32>
    %103 = vector.broadcast %102 : vector<4x1xf32> to vector<4x32xf32>
    %104 = arith.mulf %103, %2 : vector<4x32xf32>
    %105 = arith.addf %100, %104 : vector<4x32xf32>
    %106 = arith.addf %105, %2 : vector<4x32xf32>
    %c2 = arith.constant 2 : index
    %c0_51 = arith.constant 0 : index
    %c0_52 = arith.constant 0 : index
    %107 = vector.load %arg3[%c2, %c0_51, %c0_52] : memref<4x32x33xf32, #tpu.memory_space<vmem>>, vector<1x32x33xf32>
    %108 = vector.shape_cast %107 : vector<1x32x33xf32> to vector<32x33xf32>
    %cst_53 = arith.constant dense<0.000000e+00> : vector<4x33xf32>
    %109 = tpu.matmul %106, %108, %cst_53 {dimension_numbers = #tpu.dot_dimension_numbers<[1], [0], [0], [1], [0, 0, 1, 1], [], []>} : vector<4x32xf32>, vector<32x33xf32>, vector<4x33xf32> -> vector<4x33xf32>
    %c2_54 = arith.constant 2 : index
    %c0_55 = arith.constant 0 : index
    %c0_56 = arith.constant 0 : index
    %110 = vector.load %arg4[%c2_54, %c0_55, %c0_56] : memref<4x1x33xf32, #tpu.memory_space<vmem>>, vector<1x1x33xf32>
    %111 = vector.shape_cast %110 : vector<1x1x33xf32> to vector<1x33xf32>
    %112 = vector.broadcast %111 : vector<1x33xf32> to vector<4x33xf32>
    %113 = arith.addf %109, %112 : vector<4x33xf32>
    %c2_57 = arith.constant 2 : index
    %c0_58 = arith.constant 0 : index
    %c0_59 = arith.constant 0 : index
    %114 = vector.load %arg5[%c2_57, %c0_58, %c0_59] : memref<4x32x2xf32, #tpu.memory_space<vmem>>, vector<1x32x2xf32>
    %115 = vector.shape_cast %114 : vector<1x32x2xf32> to vector<32x2xf32>
    %cst_60 = arith.constant dense<0.000000e+00> : vector<8x2xf32>
    %116 = tpu.matmul %54, %115, %cst_60 {dimension_numbers = #tpu.dot_dimension_numbers<[1], [0], [0], [1], [0, 0, 1, 1], [], []>} : vector<8x32xf32>, vector<32x2xf32>, vector<8x2xf32> -> vector<8x2xf32>
    %c2_61 = arith.constant 2 : index
    %c0_62 = arith.constant 0 : index
    %c0_63 = arith.constant 0 : index
    %117 = vector.load %arg6[%c2_61, %c0_62, %c0_63] : memref<4x1x2xf32, #tpu.memory_space<vmem>>, vector<1x1x2xf32>
    %118 = vector.shape_cast %117 : vector<1x1x2xf32> to vector<1x2xf32>
    %119 = vector.broadcast %118 : vector<1x2xf32> to vector<8x2xf32>
    %120 = arith.addf %116, %119 : vector<8x2xf32>
    %c2_64 = arith.constant 2 : index
    %c0_65 = arith.constant 0 : index
    %c0_66 = arith.constant 0 : index
    %121 = vector.load %arg7[%c2_64, %c0_65, %c0_66] : memref<4x32x1xf32, #tpu.memory_space<vmem>>, vector<1x32x1xf32>
    %122 = vector.shape_cast %121 : vector<1x32x1xf32> to vector<32x1xf32>
    %cst_67 = arith.constant dense<0.000000e+00> : vector<1x4xf32>
    %123 = tpu.matmul %122, %106, %cst_67 {dimension_numbers = #tpu.dot_dimension_numbers<[0], [1], [1], [0], [0, 1, 1, 0], [], []>} : vector<32x1xf32>, vector<4x32xf32>, vector<1x4xf32> -> vector<1x4xf32>
    %124 = vector.extract_strided_slice %120 {offsets = [0, 0], sizes = [8, 1], strides = [1, 1]} : vector<8x2xf32> to vector<8x1xf32>
    %125 = vector.broadcast %124 : vector<8x1xf32> to vector<8x4xf32>
    %126 = vector.broadcast %123 : vector<1x4xf32> to vector<8x4xf32>
    %127 = arith.addf %125, %126 : vector<8x4xf32>
    %cst_68 = arith.constant dense<0xFF800000> : vector<8xf32>
    %128 = vector.multi_reduction <maximumf>, %127, %cst_68 [1] : vector<8x4xf32> to vector<8xf32>
    %129 = vector.shape_cast %128 : vector<8xf32> to vector<8x1xf32>
    %130 = vector.broadcast %129 : vector<8x1xf32> to vector<8x4xf32>
    %131 = arith.subf %127, %130 : vector<8x4xf32>
    %132 = math.exp %131 : vector<8x4xf32>
    %cst_69 = arith.constant dense<0.000000e+00> : vector<8xf32>
    %133 = vector.multi_reduction <add>, %132, %cst_69 [1] : vector<8x4xf32> to vector<8xf32>
    %134 = vector.shape_cast %133 : vector<8xf32> to vector<8x1xf32>
    %135 = tpu.reciprocal %134 {approx = true} : vector<8x1xf32> -> vector<8x1xf32>
    %136 = vector.broadcast %135 : vector<8x1xf32> to vector<8x4xf32>
    %137 = arith.mulf %132, %136 : vector<8x4xf32>
    %cst_70 = arith.constant dense<0.000000e+00> : vector<8x33xf32>
    %138 = tpu.matmul %137, %113, %cst_70 {dimension_numbers = #tpu.dot_dimension_numbers<[1], [0], [0], [1], [0, 0, 1, 1], [], []>} : vector<8x4xf32>, vector<4x33xf32>, vector<8x33xf32> -> vector<8x33xf32>
    %139 = vector.extract_strided_slice %138 {offsets = [0, 0], sizes = [8, 32], strides = [1, 1]} : vector<8x33xf32> to vector<8x32xf32>
    %140 = arith.addf %139, %54 : vector<8x32xf32>
    %141 = vector.extract_strided_slice %138 {offsets = [0, 32], sizes = [8, 1], strides = [1, 1]} : vector<8x33xf32> to vector<8x1xf32>
    %142 = vector.extract_strided_slice %120 {offsets = [0, 1], sizes = [8, 1], strides = [1, 1]} : vector<8x2xf32> to vector<8x1xf32>
    %143 = arith.addf %141, %142 : vector<8x1xf32>
    %144 = arith.negf %143 : vector<8x1xf32>
    %145 = math.exp %144 : vector<8x1xf32>
    %cst_71 = arith.constant 1.000000e+00 : f32
    %146 = vector.broadcast %cst_71 : f32 to vector<8x1xf32>
    %147 = arith.addf %146, %145 : vector<8x1xf32>
    %148 = arith.divf %146, %147 : vector<8x1xf32>
    %149 = vector.broadcast %148 : vector<8x1xf32> to vector<8x32xf32>
    %150 = arith.mulf %149, %140 : vector<8x32xf32>
    %cst_72 = arith.constant 1.000000e+00 : f32
    %151 = vector.broadcast %cst_72 : f32 to vector<8x1xf32>
    %152 = arith.subf %151, %148 : vector<8x1xf32>
    %153 = vector.broadcast %152 : vector<8x1xf32> to vector<8x32xf32>
    %154 = arith.mulf %153, %54 : vector<8x32xf32>
    %155 = arith.addf %150, %154 : vector<8x32xf32>
    %156 = arith.addf %155, %54 : vector<8x32xf32>
    %c0_73 = arith.constant 0 : index
    %c0_74 = arith.constant 0 : index
    %c0_75 = arith.constant 0 : index
    %157 = vector.load %arg8[%c0_73, %c0_74, %c0_75] : memref<2x8x32xf32, #tpu.memory_space<vmem>>, vector<1x8x32xf32>
    %158 = vector.shape_cast %157 : vector<1x8x32xf32> to vector<8x32xf32>
    %159 = vector.shape_cast %156 : vector<8x32xf32> to vector<1x8x32xf32>
    tpu.vector_store %arg8[%c0_73, %c0_74, %c0_75], %159 {strides = array<i32>} : memref<2x8x32xf32, #tpu.memory_space<vmem>>, vector<1x8x32xf32>,
    %c1_76 = arith.constant 1 : index
    %c0_77 = arith.constant 0 : index
    %c0_78 = arith.constant 0 : index
    %160 = vector.load %arg0[%c1_76, %c0_77, %c0_78] : memref<2x8x32xf32, #tpu.memory_space<vmem>>, vector<1x8x32xf32>
    %161 = vector.shape_cast %160 : vector<1x8x32xf32> to vector<8x32xf32>
    %c0_79 = arith.constant 0 : index
    %c0_80 = arith.constant 0 : index
    %162 = vector.load %arg1[%c0_79, %c0_80] : memref<4x32xf32, #tpu.memory_space<vmem>>, vector<4x32xf32>
    %c1_81 = arith.constant 1 : index
    %c0_82 = arith.constant 0 : index
    %c0_83 = arith.constant 0 : index
    %163 = vector.load %arg2[%c1_81, %c0_82, %c0_83] : memref<2x1x8xf32, #tpu.memory_space<vmem>>, vector<1x1x8xf32>
    %164 = vector.shape_cast %163 : vector<1x1x8xf32> to vector<1x8xf32>
    %c0_84 = arith.constant 0 : index
    %c0_85 = arith.constant 0 : index
    %c0_86 = arith.constant 0 : index
    %165 = vector.load %arg3[%c0_84, %c0_85, %c0_86] : memref<4x32x33xf32, #tpu.memory_space<vmem>>, vector<1x32x33xf32>
    %166 = vector.shape_cast %165 : vector<1x32x33xf32> to vector<32x33xf32>
    %cst_87 = arith.constant dense<0.000000e+00> : vector<4x33xf32>
    %167 = tpu.matmul %162, %166, %cst_87 {dimension_numbers = #tpu.dot_dimension_numbers<[1], [0], [0], [1], [0, 0, 1, 1], [], []>} : vector<4x32xf32>, vector<32x33xf32>, vector<4x33xf32> -> vector<4x33xf32>
    %c0_88 = arith.constant 0 : index
    %c0_89 = arith.constant 0 : index
    %c0_90 = arith.constant 0 : index
    %168 = vector.load %arg4[%c0_88, %c0_89, %c0_90] : memref<4x1x33xf32, #tpu.memory_space<vmem>>, vector<1x1x33xf32>
    %169 = vector.shape_cast %168 : vector<1x1x33xf32> to vector<1x33xf32>
    %170 = vector.broadcast %169 : vector<1x33xf32> to vector<4x33xf32>
    %171 = arith.addf %167, %170 : vector<4x33xf32>
    %c0_91 = arith.constant 0 : index
    %c0_92 = arith.constant 0 : index
    %c0_93 = arith.constant 0 : index
    %172 = vector.load %arg5[%c0_91, %c0_92, %c0_93] : memref<4x32x2xf32, #tpu.memory_space<vmem>>, vector<1x32x2xf32>
    %173 = vector.shape_cast %172 : vector<1x32x2xf32> to vector<32x2xf32>
    %cst_94 = arith.constant dense<0.000000e+00> : vector<8x2xf32>
    %174 = tpu.matmul %161, %173, %cst_94 {dimension_numbers = #tpu.dot_dimension_numbers<[1], [0], [0], [1], [0, 0, 1, 1], [], []>} : vector<8x32xf32>, vector<32x2xf32>, vector<8x2xf32> -> vector<8x2xf32>
    %c0_95 = arith.constant 0 : index
    %c0_96 = arith.constant 0 : index
    %c0_97 = arith.constant 0 : index
    %175 = vector.load %arg6[%c0_95, %c0_96, %c0_97] : memref<4x1x2xf32, #tpu.memory_space<vmem>>, vector<1x1x2xf32>
    %176 = vector.shape_cast %175 : vector<1x1x2xf32> to vector<1x2xf32>
    %177 = vector.broadcast %176 : vector<1x2xf32> to vector<8x2xf32>
    %178 = arith.addf %174, %177 : vector<8x2xf32>
    %c0_98 = arith.constant 0 : index
    %c0_99 = arith.constant 0 : index
    %c0_100 = arith.constant 0 : index
    %179 = vector.load %arg7[%c0_98, %c0_99, %c0_100] : memref<4x32x1xf32, #tpu.memory_space<vmem>>, vector<1x32x1xf32>
    %180 = vector.shape_cast %179 : vector<1x32x1xf32> to vector<32x1xf32>
    %cst_101 = arith.constant dense<0.000000e+00> : vector<1x4xf32>
    %181 = tpu.matmul %180, %162, %cst_101 {dimension_numbers = #tpu.dot_dimension_numbers<[0], [1], [1], [0], [0, 1, 1, 0], [], []>} : vector<32x1xf32>, vector<4x32xf32>, vector<1x4xf32> -> vector<1x4xf32>
    %182 = vector.extract_strided_slice %178 {offsets = [0, 0], sizes = [8, 1], strides = [1, 1]} : vector<8x2xf32> to vector<8x1xf32>
    %183 = vector.broadcast %182 : vector<8x1xf32> to vector<8x4xf32>
    %184 = vector.broadcast %181 : vector<1x4xf32> to vector<8x4xf32>
    %185 = arith.addf %183, %184 : vector<8x4xf32>
    %cst_102 = arith.constant dense<0xFF800000> : vector<8xf32>
    %186 = vector.multi_reduction <maximumf>, %185, %cst_102 [1] : vector<8x4xf32> to vector<8xf32>
    %187 = vector.shape_cast %186 : vector<8xf32> to vector<8x1xf32>
    %188 = vector.broadcast %187 : vector<8x1xf32> to vector<8x4xf32>
    %189 = arith.subf %185, %188 : vector<8x4xf32>
    %190 = math.exp %189 : vector<8x4xf32>
    %cst_103 = arith.constant dense<0.000000e+00> : vector<8xf32>
    %191 = vector.multi_reduction <add>, %190, %cst_103 [1] : vector<8x4xf32> to vector<8xf32>
    %192 = vector.shape_cast %191 : vector<8xf32> to vector<8x1xf32>
    %193 = tpu.reciprocal %192 {approx = true} : vector<8x1xf32> -> vector<8x1xf32>
    %194 = vector.broadcast %193 : vector<8x1xf32> to vector<8x4xf32>
    %195 = arith.mulf %190, %194 : vector<8x4xf32>
    %cst_104 = arith.constant dense<0.000000e+00> : vector<8x33xf32>
    %196 = tpu.matmul %195, %171, %cst_104 {dimension_numbers = #tpu.dot_dimension_numbers<[1], [0], [0], [1], [0, 0, 1, 1], [], []>} : vector<8x4xf32>, vector<4x33xf32>, vector<8x33xf32> -> vector<8x33xf32>
    %197 = vector.extract_strided_slice %196 {offsets = [0, 0], sizes = [8, 32], strides = [1, 1]} : vector<8x33xf32> to vector<8x32xf32>
    %198 = arith.addf %197, %161 : vector<8x32xf32>
    %199 = vector.extract_strided_slice %196 {offsets = [0, 32], sizes = [8, 1], strides = [1, 1]} : vector<8x33xf32> to vector<8x1xf32>
    %200 = vector.extract_strided_slice %178 {offsets = [0, 1], sizes = [8, 1], strides = [1, 1]} : vector<8x2xf32> to vector<8x1xf32>
    %201 = arith.addf %199, %200 : vector<8x1xf32>
    %202 = arith.negf %201 : vector<8x1xf32>
    %203 = math.exp %202 : vector<8x1xf32>
    %cst_105 = arith.constant 1.000000e+00 : f32
    %204 = vector.broadcast %cst_105 : f32 to vector<8x1xf32>
    %205 = arith.addf %204, %203 : vector<8x1xf32>
    %206 = arith.divf %204, %205 : vector<8x1xf32>
    %207 = vector.broadcast %206 : vector<8x1xf32> to vector<8x32xf32>
    %208 = arith.mulf %207, %198 : vector<8x32xf32>
    %cst_106 = arith.constant 1.000000e+00 : f32
    %209 = vector.broadcast %cst_106 : f32 to vector<8x1xf32>
    %210 = arith.subf %209, %206 : vector<8x1xf32>
    %211 = vector.broadcast %210 : vector<8x1xf32> to vector<8x32xf32>
    %212 = arith.mulf %211, %161 : vector<8x32xf32>
    %213 = arith.addf %208, %212 : vector<8x32xf32>
    %214 = arith.addf %213, %161 : vector<8x32xf32>
    %c1_107 = arith.constant 1 : index
    %c0_108 = arith.constant 0 : index
    %c0_109 = arith.constant 0 : index
    %215 = vector.load %arg3[%c1_107, %c0_108, %c0_109] : memref<4x32x33xf32, #tpu.memory_space<vmem>>, vector<1x32x33xf32>
    %216 = vector.shape_cast %215 : vector<1x32x33xf32> to vector<32x33xf32>
    %cst_110 = arith.constant dense<0.000000e+00> : vector<8x33xf32>
    %217 = tpu.matmul %214, %216, %cst_110 {dimension_numbers = #tpu.dot_dimension_numbers<[1], [0], [0], [1], [0, 0, 1, 1], [], []>} : vector<8x32xf32>, vector<32x33xf32>, vector<8x33xf32> -> vector<8x33xf32>
    %c1_111 = arith.constant 1 : index
    %c0_112 = arith.constant 0 : index
    %c0_113 = arith.constant 0 : index
    %218 = vector.load %arg4[%c1_111, %c0_112, %c0_113] : memref<4x1x33xf32, #tpu.memory_space<vmem>>, vector<1x1x33xf32>
    %219 = vector.shape_cast %218 : vector<1x1x33xf32> to vector<1x33xf32>
    %220 = vector.broadcast %219 : vector<1x33xf32> to vector<8x33xf32>
    %221 = arith.addf %217, %220 : vector<8x33xf32>
    %c1_114 = arith.constant 1 : index
    %c0_115 = arith.constant 0 : index
    %c0_116 = arith.constant 0 : index
    %222 = vector.load %arg5[%c1_114, %c0_115, %c0_116] : memref<4x32x2xf32, #tpu.memory_space<vmem>>, vector<1x32x2xf32>
    %223 = vector.shape_cast %222 : vector<1x32x2xf32> to vector<32x2xf32>
    %cst_117 = arith.constant dense<0.000000e+00> : vector<4x2xf32>
    %224 = tpu.matmul %162, %223, %cst_117 {dimension_numbers = #tpu.dot_dimension_numbers<[1], [0], [0], [1], [0, 0, 1, 1], [], []>} : vector<4x32xf32>, vector<32x2xf32>, vector<4x2xf32> -> vector<4x2xf32>
    %c1_118 = arith.constant 1 : index
    %c0_119 = arith.constant 0 : index
    %c0_120 = arith.constant 0 : index
    %225 = vector.load %arg6[%c1_118, %c0_119, %c0_120] : memref<4x1x2xf32, #tpu.memory_space<vmem>>, vector<1x1x2xf32>
    %226 = vector.shape_cast %225 : vector<1x1x2xf32> to vector<1x2xf32>
    %227 = vector.broadcast %226 : vector<1x2xf32> to vector<4x2xf32>
    %228 = arith.addf %224, %227 : vector<4x2xf32>
    %c1_121 = arith.constant 1 : index
    %c0_122 = arith.constant 0 : index
    %c0_123 = arith.constant 0 : index
    %229 = vector.load %arg7[%c1_121, %c0_122, %c0_123] : memref<4x32x1xf32, #tpu.memory_space<vmem>>, vector<1x32x1xf32>
    %230 = vector.shape_cast %229 : vector<1x32x1xf32> to vector<32x1xf32>
    %cst_124 = arith.constant dense<0.000000e+00> : vector<1x8xf32>
    %231 = tpu.matmul %230, %214, %cst_124 {dimension_numbers = #tpu.dot_dimension_numbers<[0], [1], [1], [0], [0, 1, 1, 0], [], []>} : vector<32x1xf32>, vector<8x32xf32>, vector<1x8xf32> -> vector<1x8xf32>
    %232 = vector.extract_strided_slice %228 {offsets = [0, 0], sizes = [4, 1], strides = [1, 1]} : vector<4x2xf32> to vector<4x1xf32>
    %233 = vector.broadcast %232 : vector<4x1xf32> to vector<4x8xf32>
    %234 = vector.broadcast %231 : vector<1x8xf32> to vector<4x8xf32>
    %235 = arith.addf %233, %234 : vector<4x8xf32>
    %236 = vector.broadcast %164 : vector<1x8xf32> to vector<4x8xf32>
    %237 = arith.addf %235, %236 : vector<4x8xf32>
    %cst_125 = arith.constant dense<0xFF800000> : vector<4xf32>
    %238 = vector.multi_reduction <maximumf>, %237, %cst_125 [1] : vector<4x8xf32> to vector<4xf32>
    %239 = vector.shape_cast %238 : vector<4xf32> to vector<4x1xf32>
    %240 = vector.broadcast %239 : vector<4x1xf32> to vector<4x8xf32>
    %241 = arith.subf %237, %240 : vector<4x8xf32>
    %242 = math.exp %241 : vector<4x8xf32>
    %cst_126 = arith.constant dense<0.000000e+00> : vector<4xf32>
    %243 = vector.multi_reduction <add>, %242, %cst_126 [1] : vector<4x8xf32> to vector<4xf32>
    %244 = vector.shape_cast %243 : vector<4xf32> to vector<4x1xf32>
    %245 = tpu.reciprocal %244 {approx = true} : vector<4x1xf32> -> vector<4x1xf32>
    %246 = vector.broadcast %245 : vector<4x1xf32> to vector<4x8xf32>
    %247 = arith.mulf %242, %246 : vector<4x8xf32>
    %cst_127 = arith.constant dense<0.000000e+00> : vector<4x33xf32>
    %248 = tpu.matmul %247, %221, %cst_127 {dimension_numbers = #tpu.dot_dimension_numbers<[1], [0], [0], [1], [0, 0, 1, 1], [], []>} : vector<4x8xf32>, vector<8x33xf32>, vector<4x33xf32> -> vector<4x33xf32>
    %249 = vector.extract_strided_slice %248 {offsets = [0, 0], sizes = [4, 32], strides = [1, 1]} : vector<4x33xf32> to vector<4x32xf32>
    %250 = arith.addf %249, %162 : vector<4x32xf32>
    %251 = vector.extract_strided_slice %248 {offsets = [0, 32], sizes = [4, 1], strides = [1, 1]} : vector<4x33xf32> to vector<4x1xf32>
    %252 = vector.extract_strided_slice %228 {offsets = [0, 1], sizes = [4, 1], strides = [1, 1]} : vector<4x2xf32> to vector<4x1xf32>
    %253 = arith.addf %251, %252 : vector<4x1xf32>
    %254 = arith.negf %253 : vector<4x1xf32>
    %255 = math.exp %254 : vector<4x1xf32>
    %cst_128 = arith.constant 1.000000e+00 : f32
    %256 = vector.broadcast %cst_128 : f32 to vector<4x1xf32>
    %257 = arith.addf %256, %255 : vector<4x1xf32>
    %258 = arith.divf %256, %257 : vector<4x1xf32>
    %259 = vector.broadcast %258 : vector<4x1xf32> to vector<4x32xf32>
    %260 = arith.mulf %259, %250 : vector<4x32xf32>
    %cst_129 = arith.constant 1.000000e+00 : f32
    %261 = vector.broadcast %cst_129 : f32 to vector<4x1xf32>
    %262 = arith.subf %261, %258 : vector<4x1xf32>
    %263 = vector.broadcast %262 : vector<4x1xf32> to vector<4x32xf32>
    %264 = arith.mulf %263, %162 : vector<4x32xf32>
    %265 = arith.addf %260, %264 : vector<4x32xf32>
    %266 = arith.addf %265, %162 : vector<4x32xf32>
    %c2_130 = arith.constant 2 : index
    %c0_131 = arith.constant 0 : index
    %c0_132 = arith.constant 0 : index
    %267 = vector.load %arg3[%c2_130, %c0_131, %c0_132] : memref<4x32x33xf32, #tpu.memory_space<vmem>>, vector<1x32x33xf32>
    %268 = vector.shape_cast %267 : vector<1x32x33xf32> to vector<32x33xf32>
    %cst_133 = arith.constant dense<0.000000e+00> : vector<4x33xf32>
    %269 = tpu.matmul %266, %268, %cst_133 {dimension_numbers = #tpu.dot_dimension_numbers<[1], [0], [0], [1], [0, 0, 1, 1], [], []>} : vector<4x32xf32>, vector<32x33xf32>, vector<4x33xf32> -> vector<4x33xf32>
    %c2_134 = arith.constant 2 : index
    %c0_135 = arith.constant 0 : index
    %c0_136 = arith.constant 0 : index
    %270 = vector.load %arg4[%c2_134, %c0_135, %c0_136] : memref<4x1x33xf32, #tpu.memory_space<vmem>>, vector<1x1x33xf32>
    %271 = vector.shape_cast %270 : vector<1x1x33xf32> to vector<1x33xf32>
    %272 = vector.broadcast %271 : vector<1x33xf32> to vector<4x33xf32>
    %273 = arith.addf %269, %272 : vector<4x33xf32>
    %c2_137 = arith.constant 2 : index
    %c0_138 = arith.constant 0 : index
    %c0_139 = arith.constant 0 : index
    %274 = vector.load %arg5[%c2_137, %c0_138, %c0_139] : memref<4x32x2xf32, #tpu.memory_space<vmem>>, vector<1x32x2xf32>
    %275 = vector.shape_cast %274 : vector<1x32x2xf32> to vector<32x2xf32>
    %cst_140 = arith.constant dense<0.000000e+00> : vector<8x2xf32>
    %276 = tpu.matmul %214, %275, %cst_140 {dimension_numbers = #tpu.dot_dimension_numbers<[1], [0], [0], [1], [0, 0, 1, 1], [], []>} : vector<8x32xf32>, vector<32x2xf32>, vector<8x2xf32> -> vector<8x2xf32>
    %c2_141 = arith.constant 2 : index
    %c0_142 = arith.constant 0 : index
    %c0_143 = arith.constant 0 : index
    %277 = vector.load %arg6[%c2_141, %c0_142, %c0_143] : memref<4x1x2xf32, #tpu.memory_space<vmem>>, vector<1x1x2xf32>
    %278 = vector.shape_cast %277 : vector<1x1x2xf32> to vector<1x2xf32>
    %279 = vector.broadcast %278 : vector<1x2xf32> to vector<8x2xf32>
    %280 = arith.addf %276, %279 : vector<8x2xf32>
    %c2_144 = arith.constant 2 : index
    %c0_145 = arith.constant 0 : index
    %c0_146 = arith.constant 0 : index
    %281 = vector.load %arg7[%c2_144, %c0_145, %c0_146] : memref<4x32x1xf32, #tpu.memory_space<vmem>>, vector<1x32x1xf32>
    %282 = vector.shape_cast %281 : vector<1x32x1xf32> to vector<32x1xf32>
    %cst_147 = arith.constant dense<0.000000e+00> : vector<1x4xf32>
    %283 = tpu.matmul %282, %266, %cst_147 {dimension_numbers = #tpu.dot_dimension_numbers<[0], [1], [1], [0], [0, 1, 1, 0], [], []>} : vector<32x1xf32>, vector<4x32xf32>, vector<1x4xf32> -> vector<1x4xf32>
    %284 = vector.extract_strided_slice %280 {offsets = [0, 0], sizes = [8, 1], strides = [1, 1]} : vector<8x2xf32> to vector<8x1xf32>
    %285 = vector.broadcast %284 : vector<8x1xf32> to vector<8x4xf32>
    %286 = vector.broadcast %283 : vector<1x4xf32> to vector<8x4xf32>
    %287 = arith.addf %285, %286 : vector<8x4xf32>
    %cst_148 = arith.constant dense<0xFF800000> : vector<8xf32>
    %288 = vector.multi_reduction <maximumf>, %287, %cst_148 [1] : vector<8x4xf32> to vector<8xf32>
    %289 = vector.shape_cast %288 : vector<8xf32> to vector<8x1xf32>
    %290 = vector.broadcast %289 : vector<8x1xf32> to vector<8x4xf32>
    %291 = arith.subf %287, %290 : vector<8x4xf32>
    %292 = math.exp %291 : vector<8x4xf32>
    %cst_149 = arith.constant dense<0.000000e+00> : vector<8xf32>
    %293 = vector.multi_reduction <add>, %292, %cst_149 [1] : vector<8x4xf32> to vector<8xf32>
    %294 = vector.shape_cast %293 : vector<8xf32> to vector<8x1xf32>
    %295 = tpu.reciprocal %294 {approx = true} : vector<8x1xf32> -> vector<8x1xf32>
    %296 = vector.broadcast %295 : vector<8x1xf32> to vector<8x4xf32>
    %297 = arith.mulf %292, %296 : vector<8x4xf32>
    %cst_150 = arith.constant dense<0.000000e+00> : vector<8x33xf32>
    %298 = tpu.matmul %297, %273, %cst_150 {dimension_numbers = #tpu.dot_dimension_numbers<[1], [0], [0], [1], [0, 0, 1, 1], [], []>} : vector<8x4xf32>, vector<4x33xf32>, vector<8x33xf32> -> vector<8x33xf32>
    %299 = vector.extract_strided_slice %298 {offsets = [0, 0], sizes = [8, 32], strides = [1, 1]} : vector<8x33xf32> to vector<8x32xf32>
    %300 = arith.addf %299, %214 : vector<8x32xf32>
    %301 = vector.extract_strided_slice %298 {offsets = [0, 32], sizes = [8, 1], strides = [1, 1]} : vector<8x33xf32> to vector<8x1xf32>
    %302 = vector.extract_strided_slice %280 {offsets = [0, 1], sizes = [8, 1], strides = [1, 1]} : vector<8x2xf32> to vector<8x1xf32>
    %303 = arith.addf %301, %302 : vector<8x1xf32>
    %304 = arith.negf %303 : vector<8x1xf32>
    %305 = math.exp %304 : vector<8x1xf32>
    %cst_151 = arith.constant 1.000000e+00 : f32
    %306 = vector.broadcast %cst_151 : f32 to vector<8x1xf32>
    %307 = arith.addf %306, %305 : vector<8x1xf32>
    %308 = arith.divf %306, %307 : vector<8x1xf32>
    %309 = vector.broadcast %308 : vector<8x1xf32> to vector<8x32xf32>
    %310 = arith.mulf %309, %300 : vector<8x32xf32>
    %cst_152 = arith.constant 1.000000e+00 : f32
    %311 = vector.broadcast %cst_152 : f32 to vector<8x1xf32>
    %312 = arith.subf %311, %308 : vector<8x1xf32>
    %313 = vector.broadcast %312 : vector<8x1xf32> to vector<8x32xf32>
    %314 = arith.mulf %313, %214 : vector<8x32xf32>
    %315 = arith.addf %310, %314 : vector<8x32xf32>
    %316 = arith.addf %315, %214 : vector<8x32xf32>
    %c1_153 = arith.constant 1 : index
    %c0_154 = arith.constant 0 : index
    %c0_155 = arith.constant 0 : index
    %317 = vector.load %arg8[%c1_153, %c0_154, %c0_155] : memref<2x8x32xf32, #tpu.memory_space<vmem>>, vector<1x8x32xf32>
    %318 = vector.shape_cast %317 : vector<1x8x32xf32> to vector<8x32xf32>
    %319 = vector.shape_cast %316 : vector<8x32xf32> to vector<1x8x32xf32>
    tpu.vector_store %arg8[%c1_153, %c0_154, %c0_155], %319 {strides = array<i32>} : memref<2x8x32xf32, #tpu.memory_space<vmem>>, vector<1x8x32xf32>,
    return
  }
}

</mosaic_0001>

<bundles_post_ra>
// kernel: hgat_forward.1
= control target key start
LH: loop header
LB: loop body
LE: loop exit
PB: predicated region body
PF: predicated region fallthrough
CT: control target
= control target key end

     0   :  { %v3020_v3 = vmov 0.0|0.0   ;;  %vm3021_vm0 = vmmov 0   ;;  %v3022_v7 = vmov 0.0   ;;  %s3559_s0 = inlined_call_operand.vmem [shape: f32[2,8,32], index: 0, kind: input, shape index: {}]   ;;  %s3560_s1 = inlined_call_operand.vmem [shape: f32[4,32], index: 1, kind: input, shape index: {}]   ;;  %s3561_s2 = inlined_call_operand.vmem [shape: f32[2,1,8], index: 2, kind: input, shape index: {}]   ;;  %s3562_s3 = inlined_call_operand.vmem [shape: f32[4,32,33], index: 3, kind: input, shape index: {}]   ;;  %s3563_s4 = inlined_call_operand.vmem [shape: f32[4,1,33], index: 4, kind: input, shape index: {}]   ;;  %s3564_s5 = inlined_call_operand.vmem [shape: f32[4,32,2], index: 5, kind: input, shape index: {}]   ;;  %s3565_s6 = inlined_call_operand.vmem [shape: f32[4,1,2], index: 6, kind: input, shape index: {}]   ;;  %s3566_s7 = inlined_call_operand.vmem [shape: f32[4,32,1], index: 7, kind: input, shape index: {}]   ;;  %s3567_s8 = inlined_call_operand.hbm [shape: f32[2,8,32], index: 8, kind: output, shape index: {}]  }
   0x1   :  { %v118_v0 = vld [vmem:[%s3564_s5] sm:$0xff]  ;;  %v119_v1 = vld [vmem:[%s3564_s5 + $0x8] sm:$0xff]  ;;  %v120_v2 = vld [vmem:[%s3564_s5 + $0x10] sm:$0xff]  ;;  %2862 = vmatprep.subr.bf16.mxu1 %v3020_v3  ;;  %2683 = vmatprep.mubr.msk.f32.mxu1 %vm3021_vm0, %v3022_v7 }
   0x2   :  { %v3084_v4 = vpack.c.bf16 %v119_v1, %v118_v0  ;;  %v121_v5 = vld [vmem:[%s3564_s5 + $0x18] sm:$0xff]  ;;  %v3092_v6 = vld [vmem:[%s3566_s7] sm:$0xff]  ;;  %2856 = vmatprep.subr.bf16.mxu0 %v3020_v3  ;;  %v3104_v9 = vld [vmem:[%s3566_s7 + $0x8] sm:$0xff]  ;;  %2672 = vmatprep.mubr.msk.f32.mxu0 %vm3021_vm0, %v3022_v7 }
   0x3   :  { %206 = vxpose.xlu0.b32.start [1/4] (short) (narrow) %v3092_v6, 8  ;;  %v3099_v8 = vpack.c.bf16 %v121_v5, %v120_v2  ;;  %v33_v10 = vld [vmem:[%s3562_s3] sm:$0xff]  ;;  %v34_v11 = vld [vmem:[%s3562_s3 + $0x8] sm:$0xff]  ;;  %v35_v13 = vld [vmem:[%s3562_s3 + $0x10] sm:$0xff] }
   0x4   :  { %2864 = vmatpush3.bf16.msra.mxu1 %v3084_v4  ;;  %v3115_v12 = vpack.c.bf16 %v34_v11, %v33_v10  ;;  %v36_v14 = vld [vmem:[%s3562_s3 + $0x18] sm:$0xff] }
   0x5   :  { %2865 = vmatprep.subr.bf16.mxu1 %v3020_v3 }
   0x6   :  { %13 = vsyncpa [#allocation3], 0  ;;  %2858 = vmatpush3.bf16.msra.mxu0 %v3115_v12  ;;  %v3129_v15 = vld [vmem:[%s3559_s0] sm:$0xff]  ;;  %vm44_vm1 = vcmask 261120   ;;  %v3134_v16 = vld [vmem:[%s3566_s7 + $0x10] sm:$0xff]  ;;  %v3137_v17 = vpack.c.bf16 %v36_v14, %v35_v13  ;;  %v3023_v20 = vmov 0   ;;  %v316_v30 = vlaneseq }
   0x7   :  { %207 = vxpose.xlu0.b32.cont [2/4] (short) (narrow) %v3104_v9, 8  ;;  %2859 = vmatprep.subr.bf16.mxu0 %v3020_v3  ;;  %v3146_v18 = vld [vmem:[%s3566_s7 + $0x18] sm:$0xff]  ;;  %v3152_v19 = vld [vmem:[%s3560_s1] sm:$0xf]  ;;  %vm336_vm2 = vcmask 1043456   ;;  %vm321_vm3 = vcmask 31744  }
   0x8   :  { %2867 = vmatpush3.bf16.msra.mxu1 %v3099_v8  ;;  %2937 = vset.pattern.permute.xlu1 %v3023_v20  ;;  %v3172_v22 = vld [vmem:[%s3565_s6] ss:$0 sm:$0xff]  ;;  %v317_v31 = vshrl.u32 %v316_v30, 7  ;;  %s3024_s15 = smov 31   ;;  %v3025_v47 = vmov 32   ;;  %v2485_v49 = vld [vmem:[%s3564_s5 + $0x28] sm:$0xff] }
   0x9   :  { %2691 = vmatprep.subr.mxu1 %v3022_v7  ;;  %v3178_v26 = vld [vmem:[%s3563_s4] ss:$0 sm:$0xff]  ;;  %v2486_v50 = vld [vmem:[%s3564_s5 + $0x30] sm:$0xff]  ;;  %v2487_v52 = vld [vmem:[%s3564_s5 + $0x38] sm:$0xff]  ;;  %vm732_vm4 = vcmask 60416   ;;  %vm744_vm5 = vcmask 64512  }
   0xa   :  { %2861 = vmatpush3.bf16.msra.mxu0 %v3137_v17  ;;  %v3183_v34 = vsub.s32 0, %v317_v31  ;;  %v2484_v48 = vld [vmem:[%s3564_s5 + $0x20] sm:$0xff]  ;;  %v3209_v53 = vpack.c.bf16 %v2487_v52, %v2486_v50  ;;  %v2478_v55 = vld [vmem:[%s3562_s3 + $0x28] sm:$0xff]  ;;  %v2479_v56 = vld [vmem:[%s3562_s3 + $0x30] sm:$0xff] }
   0xb   :  { %2684 = vmatmul.mubr.msk.f32.vlgmr.msra.gmra.mrb[0].mxu1 %vm44_vm1, %v3129_v15  ;;  %208 = vxpose.xlu0.b32.cont [3/4] (short) (narrow) %v3134_v16, 8  ;;  %v3203_v51 = vpack.c.bf16 %v2485_v49, %v2484_v48  ;;  %v2477_v54 = vld [vmem:[%s3562_s3 + $0x20] sm:$0xff]  ;;  %v2480_v58 = vld [vmem:[%s3562_s3 + $0x38] sm:$0xff]  ;;  %v3248_v13 = vld [vmem:[%s3566_s7 + $0x28] sm:$0xff] }
   0xc   :  { %2693 = vmatprep.mubr.msk.f32.mxu1 %vm3021_vm0, %v3022_v7  ;;  %2686 = vmatprep.subr.mxu0 %v3022_v7  ;;  %v3227_v57 = vpack.c.bf16 %v2478_v55, %v2477_v54  ;;  %v3233_v59 = vpack.c.bf16 %v2480_v58, %v2479_v56  ;;  %v3242_v11 = vld [vmem:[%s3566_s7 + $0x20] sm:$0xff]  ;;  %v3254_v14 = vld [vmem:[%s3566_s7 + $0x30] sm:$0xff] }
   0xd   :  { %2673 = vmatmul.mubr.msk.f32.vlgmr.msra.gmra.mrb[0].mxu0 %vm44_vm1, %v3152_v19  ;;  %v2507_v58 = vld [vmem:[%s3564_s5 + $0x40] sm:$0xff] }
   0xe   :  { %2688 = vmatprep.mubr.msk.f32.mxu0 %vm3021_vm0, %v3022_v7 }
   0xf   :  { %209 = vxpose.xlu0.b32.end [4/4] (short) (narrow) %v3146_v18, 8 }
  0x13   :  { %2687 = vmatpush3.xpose.msk.msra.mxu0 %vm44_vm1, %v3152_v19 }
  0x14   :  { %2868 = vmatprep.subr.bf16.mxu0 %v3020_v3 }
  0x38   :  { %2939 = vset.pattern.permute.xlu0 %v3025_v47 }
  0x83   :  { %v222_v21 = vpop.trf.xlu0 }
  0x84   :  { %2689 = vmatmul.mubr.msk.f32.vlgmr.msra.gmra.mrb[2].mxu0 %vm44_vm1, %v222_v21  ;;  %v3260_v21 = vld [vmem:[%s3566_s7 + $0x38] sm:$0xff] }
  0x85   :  { %2704 = vmatprep.mubr.msk.f32.mxu0 %vm3021_vm0, %v3022_v7  ;;  %2870 = vmatpush3.bf16.msra.mxu0 %v3227_v57 }
  0x86   :  { %2871 = vmatprep.subr.bf16.mxu0 %v3020_v3 }
  0x89   :  { %2873 = vmatpush3.bf16.msra.mxu0 %v3233_v59 }
  0x8a   :  { %2718 = vmatprep.subr.mxu0 %v3022_v7 }
  0xde   :  { %v198_v23 = vpop.f32.mrb[0].mxu1 }
  0xdf   :  { %v199_v24 = vadd.f32 %v3172_v22, %v198_v23  ;;  %v2685_v25 = vpop.f32.mrb[1].mxu1  ;;  %v3266_v23 = vld [vmem:[%s3565_s6 + $0x1] ss:$0 sm:$0xff] }
  0xe0   :  { %v114_v27 = vpop.f32.mrb[0].mxu0 }
  0xe1   :  { %313 = vperm.xlu1 %2937, %v199_v24   ;;  %v115_v28 = vadd.f32 %v3178_v26, %v114_v27  ;;  %v2674_v29 = vpop.f32.mrb[1].mxu0 }
  0xe3   :  { %2692 = vmatpush3.msk.msra.mxu1 %vm336_vm2, %v115_v28 }
  0xe4   :  { %2874 = vmatprep.subr.bf16.mxu1 %v3020_v3 }
  0xe5   :  { %2938 = vset.pattern.permute.xlu1 %v3025_v47 }
 0x157   :  { %v307_v32 = vpop.f32.mrb[2].mxu0 }
 0x158   :  { %v2690_v33 = vpop.f32.mrb[3].mxu0  ;;  %v319_v35 = vrot.slane %v307_v32, %v3183_v34 }
 0x160   :  { %v314_v36 = vpop.permute.xlu1 %313 }
 0x161   :  { %v320_v37 = vadd.f32 %v319_v35, %v314_v36 }
 0x163   :  { %v322_v38 = vsel %vm321_vm3, %v320_v37, -inf }
 0x164   :  { %323 = vmax.xlane.f32.xlu1 %v322_v38 }
 0x175   :  { %411 = vrot.lane.b32.xlu1 %v199_v24, %s3024_s15 }
 0x1f1   :  { %v324_v39 = vpop.xlane.xlu1 %323 }
 0x1f2   :  { %v325_v40 = vsub.f32 %v320_v37, %v324_v39 }
 0x1f4   :  { %v326_v41 = vmul.f32 1.442695, %v325_v40 }
 0x1f5   :  { %v412_v60 = vpop.permute.xlu1 %411 }
 0x1f6   :  { %2948 = vpow2.f32 %v326_v41 }
 0x200   :  { %v2949_v42 = vpop.eup %2948 }
 0x201   :  { %v328_v43 = vsel %vm321_vm3, %v2949_v42, 0.0 }
 0x202   :  { %329 = vadd.xlane.f32.xlu0 %v328_v43 }
 0x28f   :  { %v330_v44 = vpop.xlane.xlu0 %329 }
 0x290   :  { %2950 = vrcp.f32 %v330_v44  ;;  %v2497_v44 = vld [vmem:[%s3561_s2] ss:$0 sm:$0xff] }
 0x29a   :  { %v2951_v45 = vpop.eup %2950 }
 0x29b   :  { %v332_v46 = vmul.f32 %v2951_v45, %v2949_v42 }
 0x29d   :  { %2694 = vmatmul.mubr.msk.f32.vlgmr.msra.gmra.mrb[2].mxu1 %vm321_vm3, %v332_v46 }
 0x29e   :  { %2715 = vmatprep.mubr.msk.f32.mxu1 %vm3021_vm0, %v3022_v7  ;;  %2876 = vmatpush3.bf16.msra.mxu1 %v3203_v51 }
 0x29f   :  { %2877 = vmatprep.subr.bf16.mxu1 %v3020_v3 }
 0x2a2   :  { %2879 = vmatpush3.bf16.msra.mxu1 %v3209_v53 }
 0x2a3   :  { %2723 = vmatprep.subr.mxu1 %v3022_v7 }
 0x2a5   :  { %2716 = vmatmul.mubr.msk.f32.vlgmr.msra.gmra.mrb[4].mxu1 %vm44_vm1, %v3152_v19 }
 0x2a6   :  { %2725 = vmatprep.mubr.msk.f32.mxu1 %vm3021_vm0, %v3022_v7 }
 0x370   :  { %v406_v61 = vpop.f32.mrb[2].mxu1 }
 0x371   :  { %v414_v62 = vadd.f32 %v412_v60, %v406_v61  ;;  %v2695_v63 = vpop.f32.mrb[3].mxu1  ;;  %v410_v29 = vadd.f32 %v406_v61, %v3129_v15  ;;  %v2508_v60 = vld [vmem:[%s3564_s5 + $0x48] sm:$0xff] }
 0x373   :  { %v2476_v0 = vmul.f32 -1.442695, %v414_v62  ;;  %v3305_v62 = vpack.c.bf16 %v2508_v60, %v2507_v58 }
 0x375   :  { %2952 = vpow2.f32 %v2476_v0  ;;  %v2509_v0 = vld [vmem:[%s3564_s5 + $0x50] sm:$0xff] }
 0x378   :  { %v601_v24 = vpop.f32.mrb[4].mxu1 }
 0x379   :  { %v602_v25 = vadd.f32 %v3266_v23, %v601_v24  ;;  %v2717_v27 = vpop.f32.mrb[5].mxu1  ;;  %v2502_v24 = vld [vmem:[%s3562_s3 + $0x50] sm:$0xff] }
 0x37a   :  { %v2503_v27 = vld [vmem:[%s3562_s3 + $0x58] sm:$0xff] }
 0x37f   :  { %v2953_v1 = vpop.eup %2952 }
 0x380   :  { %v418_v2 = vadd.f32 1.0, %v2953_v1  ;;  %v2510_v1 = vld [vmem:[%s3564_s5 + $0x58] sm:$0xff] }
 0x382   :  { %2954 = vrcp.f32 %v418_v2  ;;  %v3315_v2 = vpack.c.bf16 %v2510_v1, %v2509_v0 }
 0x38c   :  { %v2955_v5 = vpop.eup %2954 }
 0x38d   :  { %423 = vperm.xlu1 %2938, %v2955_v5   ;;  %v427_v10 = vsub.f32 1.0, %v2955_v5  ;;  %v2500_v5 = vld [vmem:[%s3562_s3 + $0x40] sm:$0xff] }
 0x38f   :  { %430 = vperm.xlu0 %2939, %v427_v10   ;;  %v2501_v10 = vld [vmem:[%s3562_s3 + $0x48] sm:$0xff] }
 0x393   :  { %2940 = vset.pattern.permute.xlu0 %v3023_v20 }
 0x394   :  { %717 = vperm.xlu0 %2940, %v602_v25  }
 0x398   :  { %2941 = vset.pattern.permute.xlu0 %v3025_v47 }
 0x3b6   :  { %610 = vxpose.xlu1.b32.start [1/4] (short) (narrow) %v3242_v11, 8 }
 0x3ba   :  { %611 = vxpose.xlu1.b32.cont [2/4] (short) (narrow) %v3248_v13, 8 }
 0x3be   :  { %612 = vxpose.xlu1.b32.cont [3/4] (short) (narrow) %v3254_v14, 8 }
 0x3c2   :  { %613 = vxpose.xlu1.b32.end [4/4] (short) (narrow) %v3260_v21, 8 }
 0x40c   :  { %v424_v28 = vpop.permute.xlu1 %423 }
 0x40d   :  { %v426_v31 = vmul.f32 %v424_v28, %v410_v29  ;;  %v3341_v28 = vpack.c.bf16 %v2503_v27, %v2502_v24 }
 0x40e   :  { %v431_v30 = vpop.permute.xlu0 %430 }
 0x40f   :  { %v433_v32 = vmul.f32 %v431_v30, %v3129_v15 }
 0x411   :  { %v434_v33 = vadd.f32 %v433_v32, %v426_v31 }
 0x413   :  { %v3273_v35 = vadd.f32 %v434_v33, %v3129_v15  ;;  %v3288_v15 = vld [vmem:[%s3563_s4 + $0x1] ss:$0 sm:$0xff]  ;;  %v718_v41 = vpop.permute.xlu0 %717 }
 0x415   :  { %2705 = vmatmul.mubr.msk.f32.vlgmr.msra.gmra.mrb[4].mxu0 %vm44_vm1, %v3273_v35 }
 0x416   :  { %2719 = vmatpush3.xpose.msk.msra.mxu0 %vm44_vm1, %v3273_v35  ;;  %2720 = vmatprep.mubr.msk.f32.mxu0 %vm3021_vm0, %v3022_v7 }
 0x417   :  { %2880 = vmatprep.subr.bf16.mxu0 %v3020_v3 }
 0x436   :  { %v626_v36 = vpop.trf.xlu1 }
 0x437   :  { %2721 = vmatmul.mubr.msk.f32.vlgmr.msra.gmra.mrb[6].mxu0 %vm44_vm1, %v626_v36 }
 0x438   :  { %2736 = vmatprep.mubr.msk.f32.mxu0 %vm3021_vm0, %v3022_v7 }
 0x4e8   :  { %v518_v37 = vpop.f32.mrb[4].mxu0 }
 0x4e9   :  { %v519_v38 = vadd.f32 %v3288_v15, %v518_v37  ;;  %v2706_v39 = vpop.f32.mrb[5].mxu0 }
 0x4eb   :  { %2724 = vmatpush3.msra.mxu1 %v519_v38 }
 0x4ec   :  { %2886 = vmatprep.subr.bf16.mxu1 %v3020_v3 }
 0x50a   :  { %v711_v40 = vpop.f32.mrb[6].mxu0 }
 0x50b   :  { %v723_v42 = vrot.slane %v711_v40, %v3183_v34  ;;  %v2722_v43 = vpop.f32.mrb[7].mxu0 }
 0x50d   :  { %v724_v45 = vadd.f32 %v723_v42, %v718_v41  ;;  %v3349_v42 = vld [vmem:[%s3565_s6 + $0x2] ss:$0 sm:$0xff] }
 0x50f   :  { %v731_v46 = vadd.f32 %v2497_v44, %v724_v45  ;;  %v3359_v44 = vld [vmem:[%s3566_s7 + $0x40] sm:$0xff]  ;;  %v3365_v45 = vld [vmem:[%s3566_s7 + $0x48] sm:$0xff] }
 0x511   :  { %v733_v48 = vsel %vm732_vm4, %v731_v46, -inf }
 0x512   :  { %734 = vmax.xlane.f32.xlu0 %v733_v48  ;;  %v3377_v48 = vld [vmem:[%s3566_s7 + $0x58] sm:$0xff] }
 0x528   :  { %819 = vrot.lane.b32.xlu0 %v602_v25, %s3024_s15  ;;  %v3335_v25 = vpack.c.bf16 %v2501_v10, %v2500_v5 }
 0x52a   :  { %2882 = vmatpush3.bf16.msra.mxu0 %v3335_v25 }
 0x52b   :  { %2883 = vmatprep.subr.bf16.mxu0 %v3020_v3 }
 0x52e   :  { %2885 = vmatpush3.bf16.msra.mxu0 %v3341_v28 }
 0x52f   :  { %2750 = vmatprep.subr.mxu0 %v3022_v7 }
 0x59f   :  { %v735_v49 = vpop.xlane.xlu0 %734 }
 0x5a0   :  { %v736_v50 = vsub.f32 %v731_v46, %v735_v49  ;;  %v3371_v46 = vld [vmem:[%s3566_s7 + $0x50] sm:$0xff] }
 0x5a2   :  { %v737_v52 = vmul.f32 1.442695, %v736_v50 }
 0x5a3   :  { %v820_v29 = vpop.permute.xlu0 %819 }
 0x5a4   :  { %2956 = vpow2.f32 %v737_v52 }
 0x5ae   :  { %v2957_v54 = vpop.eup %2956 }
 0x5af   :  { %v739_v55 = vsel %vm732_vm4, %v2957_v54, 0.0 }
 0x5b0   :  { %740 = vadd.xlane.f32.xlu1 %v739_v55 }
 0x63d   :  { %v741_v56 = vpop.xlane.xlu1 %740 }
 0x63e   :  { %2958 = vrcp.f32 %v741_v56 }
 0x648   :  { %v2959_v61 = vpop.eup %2958 }
 0x649   :  { %v743_v63 = vmul.f32 %v2959_v61, %v2957_v54 }
 0x64b   :  { %2726 = vmatmul.mubr.msk.f32.vlgmr.msra.gmra.mrb[6].mxu1 %vm744_vm5, %v743_v63 }
 0x64c   :  { %2888 = vmatpush3.bf16.msra.mxu1 %v3305_v62  ;;  %2747 = vmatprep.mubr.msk.f32.mxu1 %vm3021_vm0, %v3022_v7 }
 0x64d   :  { %2889 = vmatprep.subr.bf16.mxu1 %v3020_v3 }
 0x650   :  { %2891 = vmatpush3.bf16.msra.mxu1 %v3315_v2 }
 0x651   :  { %2755 = vmatprep.subr.mxu1 %v3022_v7 }
 0x653   :  { %2748 = vmatmul.mubr.msk.f32.vlgmr.msra.gmra.mrb[8].mxu1 %vm44_vm1, %v3273_v35 }
 0x654   :  { %2757 = vmatprep.mubr.msk.f32.mxu1 %vm3021_vm0, %v3022_v7 }
 0x71e   :  { %v814_v30 = vpop.f32.mrb[6].mxu1 }
 0x71f   :  { %v822_v31 = vadd.f32 %v820_v29, %v814_v30  ;;  %v2727_v32 = vpop.f32.mrb[7].mxu1  ;;  %v818_v50 = vadd.f32 %v814_v30, %v3152_v19 }
 0x721   :  { %v2499_v33 = vmul.f32 -1.442695, %v822_v31 }
 0x723   :  { %2960 = vpow2.f32 %v2499_v33  ;;  %v3410_v33 = vld [vmem:[%s3560_s1] sm:$0xf] }
 0x726   :  { %v1009_v36 = vpop.f32.mrb[8].mxu1 }
 0x727   :  { %v2749_v37 = vpop.f32.mrb[9].mxu1  ;;  %v3352_v43 = vadd.f32 %v3349_v42, %v1009_v36 }
 0x72d   :  { %v2961_v38 = vpop.eup %2960 }
 0x72e   :  { %v826_v39 = vadd.f32 1.0, %v2961_v38 }
 0x730   :  { %2962 = vrcp.f32 %v826_v39 }
 0x73a   :  { %v2963_v40 = vpop.eup %2962 }
 0x73b   :  { %831 = vperm.xlu1 %2938, %v2963_v40   ;;  %v835_v41 = vsub.f32 1.0, %v2963_v40 }
 0x73d   :  { %838 = vperm.xlu0 %2941, %v835_v41  }
 0x741   :  { %2942 = vset.pattern.permute.xlu0 %v3023_v20 }
 0x742   :  { %1125 = vperm.xlu0 %2942, %v3352_v43  }
 0x764   :  { %1018 = vxpose.xlu1.b32.start [1/4] (short) (narrow) %v3359_v44, 8 }
 0x768   :  { %1019 = vxpose.xlu1.b32.cont [2/4] (short) (narrow) %v3365_v45, 8 }
 0x76c   :  { %1020 = vxpose.xlu1.b32.cont [3/4] (short) (narrow) %v3371_v46, 8 }
 0x770   :  { %1021 = vxpose.xlu1.b32.end [4/4] (short) (narrow) %v3377_v48, 8 }
 0x78e   :  { %2943 = vset.pattern.permute.xlu1 %v3023_v20 }
 0x7ba   :  { %v832_v49 = vpop.permute.xlu1 %831 }
 0x7bb   :  { %v834_v54 = vmul.f32 %v832_v49, %v818_v50 }
 0x7bc   :  { %v839_v52 = vpop.permute.xlu0 %838 }
 0x7bd   :  { %v841_v55 = vmul.f32 %v839_v52, %v3152_v19 }
 0x7bf   :  { %v842_v56 = vadd.f32 %v841_v55, %v834_v54 }
 0x7c1   :  { %v843_v58 = vadd.f32 %v842_v56, %v3152_v19  ;;  %v3399_v19 = vld [vmem:[%s3563_s4 + $0x2] ss:$0 sm:$0xff] }
 0x7c3   :  { %2737 = vmatmul.mubr.msk.f32.vlgmr.msra.gmra.mrb[8].mxu0 %vm44_vm1, %v843_v58 }
 0x7c4   :  { %2751 = vmatpush3.xpose.msk.msra.mxu0 %vm44_vm1, %v843_v58  ;;  %2752 = vmatprep.mubr.msk.f32.mxu0 %vm3021_vm0, %v3022_v7 }
 0x7c5   :  { %2892 = vmatprep.subr.bf16.mxu0 %v3020_v3 }
 0x7e4   :  { %v1034_v60 = vpop.trf.xlu1 }
 0x7e5   :  { %2753 = vmatmul.mubr.msk.f32.vlgmr.msra.gmra.mrb[10].mxu0 %vm44_vm1, %v1034_v60 }
 0x7e6   :  { %2894 = vmatpush3.bf16.msra.mxu0 %v3115_v12  ;;  %2768 = vmatprep.mubr.msk.f32.mxu0 %vm3021_vm0, %v3022_v7 }
 0x7e7   :  { %2895 = vmatprep.subr.bf16.mxu0 %v3020_v3 }
 0x7ea   :  { %2897 = vmatpush3.bf16.msra.mxu0 %v3137_v17  ;;  %v1126_v17 = vpop.permute.xlu0 %1125 }
 0x7eb   :  { %2782 = vmatprep.subr.mxu0 %v3022_v7 }
 0x7ed   :  { %2769 = vmatmul.mubr.msk.f32.vlgmr.msra.gmra.mrb[12].mxu0 %vm44_vm1, %v3410_v33 }
 0x7ee   :  { %2784 = vmatprep.mubr.msk.f32.mxu0 %vm3021_vm0, %v3022_v7 }
 0x7f3   :  { %2783 = vmatpush3.xpose.msk.msra.mxu0 %vm44_vm1, %v3410_v33 }
 0x7f4   :  { %2904 = vmatprep.subr.bf16.mxu0 %v3020_v3 }
 0x896   :  { %v926_v61 = vpop.f32.mrb[8].mxu0 }
 0x897   :  { %v927_v63 = vadd.f32 %v3399_v19, %v926_v61  ;;  %v2738_v0 = vpop.f32.mrb[9].mxu0 }
 0x899   :  { %2756 = vmatpush3.msk.msra.mxu1 %vm336_vm2, %v927_v63 }
 0x89a   :  { %2898 = vmatprep.subr.bf16.mxu1 %v3020_v3 }
 0x8b8   :  { %v1119_v12 = vpop.f32.mrb[10].mxu0 }
 0x8b9   :  { %v1131_v1 = vrot.slane %v1119_v12, %v3183_v34  ;;  %v2754_v5 = vpop.f32.mrb[11].mxu0 }
 0x8bb   :  { %v1132_v10 = vadd.f32 %v1131_v1, %v1126_v17 }
 0x8bd   :  { %v1133_v24 = vsel %vm321_vm3, %v1132_v10, -inf }
 0x8be   :  { %1134 = vmax.xlane.f32.xlu0 %v1133_v24 }
 0x94b   :  { %v1135_v27 = vpop.xlane.xlu0 %1134 }
 0x94c   :  { %v1136_v29 = vsub.f32 %v1132_v10, %v1135_v27 }
 0x94e   :  { %v1137_v30 = vmul.f32 1.442695, %v1136_v29 }
 0x950   :  { %2964 = vpow2.f32 %v1137_v30 }
 0x95a   :  { %v2965_v31 = vpop.eup %2964 }
 0x95b   :  { %v1139_v32 = vsel %vm321_vm3, %v2965_v31, 0.0 }
 0x95c   :  { %1140 = vadd.xlane.f32.xlu0 %v1139_v32 }
 0x989   :  { %1424 = vxpose.xlu0.b32.start [1/4] (short) (narrow) %v3092_v6, 8  ;;  %v3432_v6 = vld [vmem:[%s3559_s0 + $0x8] sm:$0xff] }
 0x98d   :  { %1425 = vxpose.xlu0.b32.cont [2/4] (short) (narrow) %v3104_v9, 8 }
 0x991   :  { %1426 = vxpose.xlu0.b32.cont [3/4] (short) (narrow) %v3134_v16, 8 }
 0x995   :  { %1427 = vxpose.xlu0.b32.end [4/4] (short) (narrow) %v3146_v18, 8 }
 0x9e9   :  { %v1141_v36 = vpop.xlane.xlu0 %1140 }
 0x9ea   :  { %2966 = vrcp.f32 %v1141_v36 }
 0x9f4   :  { %v2967_v37 = vpop.eup %2966 }
 0x9f5   :  { %v1143_v38 = vmul.f32 %v2967_v37, %v2965_v31 }
 0x9f7   :  { %2758 = vmatmul.mubr.msk.f32.vlgmr.msra.gmra.mrb[10].mxu1 %vm321_vm3, %v1143_v38 }
 0x9f8   :  { %2900 = vmatpush3.bf16.msra.mxu1 %v3084_v4  ;;  %2779 = vmatprep.mubr.msk.f32.mxu1 %vm3021_vm0, %v3022_v7 }
 0x9f9   :  { %2901 = vmatprep.subr.bf16.mxu1 %v3020_v3 }
 0x9fc   :  { %2903 = vmatpush3.bf16.msra.mxu1 %v3099_v8  ;;  %v1332_v8 = vpop.f32.mrb[12].mxu0 }
 0x9fd   :  { %2787 = vmatprep.subr.mxu1 %v3022_v7  ;;  %v1333_v9 = vadd.f32 %v3178_v26, %v1332_v8  ;;  %v2770_v16 = vpop.f32.mrb[13].mxu0 }
 0x9fe   :  { %v2554_v16 = vld [vmem:[%s3561_s2 + $0x1] ss:$0 sm:$0xff]  ;;  %s3026_s2 = smov [#allocation2]  }
 0x9ff   :  { %2780 = vmatmul.mubr.msk.f32.vlgmr.msra.gmra.mrb[12].mxu1 %vm44_vm1, %v3432_v6 }
 0xa00   :  { %2789 = vmatprep.mubr.msk.f32.mxu1 %vm3021_vm0, %v3022_v7  ;;  %2788 = vmatpush3.msk.msra.mxu1 %vm336_vm2, %v1333_v9 }
 0xa01   :  { %2910 = vmatprep.subr.bf16.mxu1 %v3020_v3 }
 0xa09   :  { %v1440_v4 = vpop.trf.xlu0 }
 0xa0a   :  { %2785 = vmatmul.mubr.msk.f32.vlgmr.msra.gmra.mrb[14].mxu0 %vm44_vm1, %v1440_v4 }
 0xa0b   :  { %2906 = vmatpush3.bf16.msra.mxu0 %v3227_v57  ;;  %2800 = vmatprep.mubr.msk.f32.mxu0 %vm3021_vm0, %v3022_v7 }
 0xa0c   :  { %2907 = vmatprep.subr.bf16.mxu0 %v3020_v3 }
 0xa0f   :  { %2909 = vmatpush3.bf16.msra.mxu0 %v3233_v59 }
 0xa10   :  { %2814 = vmatprep.subr.mxu0 %v3022_v7 }
 0xaca   :  { %v3449_v18 = vpop.f32.mrb[10].mxu1 }
 0xacb   :  { %v2759_v57 = vpop.f32.mrb[11].mxu1 }
 0xad2   :  { %v1416_v39 = vpop.f32.mrb[12].mxu1 }
 0xad3   :  { %v1417_v40 = vadd.f32 %v3172_v22, %v1416_v39  ;;  %v2781_v41 = vpop.f32.mrb[13].mxu1 }
 0xad5   :  { %1531 = vperm.xlu1 %2943, %v1417_v40  }
 0xad9   :  { %2944 = vset.pattern.permute.xlu1 %v3025_v47 }
 0xadd   :  { %v1525_v59 = vpop.f32.mrb[14].mxu0 }
 0xade   :  { %v2786_v49 = vpop.f32.mrb[15].mxu0  ;;  %v1537_v50 = vrot.slane %v1525_v59, %v3183_v34 }
 0xb54   :  { %v1532_v26 = vpop.permute.xlu1 %1531 }
 0xb55   :  { %v1538_v52 = vadd.f32 %v1537_v50, %v1532_v26 }
 0xb57   :  { %v1539_v54 = vsel %vm321_vm3, %v1538_v52, -inf }
 0xb58   :  { %1540 = vmax.xlane.f32.xlu1 %v1539_v54 }
 0xb69   :  { %1627 = vrot.lane.b32.xlu1 %v1417_v40, %s3024_s15 }
 0xbe5   :  { %v1541_v55 = vpop.xlane.xlu1 %1540 }
 0xbe6   :  { %v1542_v56 = vsub.f32 %v1538_v52, %v1541_v55 }
 0xbe8   :  { %v1543_v58 = vmul.f32 1.442695, %v1542_v56 }
 0xbe9   :  { %v1628_v12 = vpop.permute.xlu1 %1627 }
 0xbea   :  { %2968 = vpow2.f32 %v1543_v58 }
 0xbf4   :  { %v2969_v22 = vpop.eup %2968 }
 0xbf5   :  { %v1545_v60 = vsel %vm321_vm3, %v2969_v22, 0.0 }
 0xbf6   :  { %1546 = vadd.xlane.f32.xlu0 %v1545_v60 }
 0xc83   :  { %v1547_v61 = vpop.xlane.xlu0 %1546 }
 0xc84   :  { %2970 = vrcp.f32 %v1547_v61 }
 0xc8e   :  { %v2971_v63 = vpop.eup %2970 }
 0xc8f   :  { %v1549_v0 = vmul.f32 %v2971_v63, %v2969_v22 }
 0xc91   :  { %2790 = vmatmul.mubr.msk.f32.vlgmr.msra.gmra.mrb[14].mxu1 %vm321_vm3, %v1549_v0 }
 0xc92   :  { %2912 = vmatpush3.bf16.msra.mxu1 %v3203_v51  ;;  %2811 = vmatprep.mubr.msk.f32.mxu1 %vm3021_vm0, %v3022_v7 }
 0xc93   :  { %2913 = vmatprep.subr.bf16.mxu1 %v3020_v3 }
 0xc96   :  { %2915 = vmatpush3.bf16.msra.mxu1 %v3209_v53 }
 0xc97   :  { %2819 = vmatprep.subr.mxu1 %v3022_v7 }
 0xc99   :  { %2812 = vmatmul.mubr.msk.f32.vlgmr.msra.gmra.mrb[16].mxu1 %vm44_vm1, %v3410_v33 }
 0xc9a   :  { %2821 = vmatprep.mubr.msk.f32.mxu1 %vm3021_vm0, %v3022_v7 }
 0xd64   :  { %v1622_v1 = vpop.f32.mrb[14].mxu1 }
 0xd65   :  { %v1630_v5 = vadd.f32 %v1628_v12, %v1622_v1  ;;  %v2791_v17 = vpop.f32.mrb[15].mxu1  ;;  %v1626_v32 = vadd.f32 %v3432_v6, %v1622_v1 }
 0xd67   :  { %v2533_v51 = vmul.f32 -1.442695, %v1630_v5 }
 0xd69   :  { %2972 = vpow2.f32 %v2533_v51 }
 0xd6c   :  { %v1813_v10 = vpop.f32.mrb[16].mxu1 }
 0xd6d   :  { %v1814_v24 = vadd.f32 %v3266_v23, %v1813_v10  ;;  %v2813_v27 = vpop.f32.mrb[17].mxu1 }
 0xd6f   :  { %1928 = vperm.xlu0 %2942, %v1814_v24  }
 0xd73   :  { %v2973_v53 = vpop.eup %2972  ;;  %2945 = vset.pattern.permute.xlu0 %v3025_v47 }
 0xd74   :  { %v1634_v29 = vadd.f32 1.0, %v2973_v53 }
 0xd76   :  { %2974 = vrcp.f32 %v1634_v29 }
 0xd80   :  { %v2975_v30 = vpop.eup %2974 }
 0xd81   :  { %1639 = vperm.xlu1 %2944, %v2975_v30   ;;  %v1643_v31 = vsub.f32 1.0, %v2975_v30 }
 0xd85   :  { %1646 = vperm.xlu1 %2944, %v1643_v31  }
 0xdae   :  { %1821 = vxpose.xlu1.b32.start [1/4] (short) (narrow) %v3242_v11, 8 }
 0xdb2   :  { %1822 = vxpose.xlu1.b32.cont [2/4] (short) (narrow) %v3248_v13, 8 }
 0xdb6   :  { %1823 = vxpose.xlu1.b32.cont [3/4] (short) (narrow) %v3254_v14, 8 }
 0xdba   :  { %1824 = vxpose.xlu1.b32.end [4/4] (short) (narrow) %v3260_v21, 8 }
 0xdd8   :  { %2946 = vset.pattern.permute.xlu1 %v3023_v20 }
 0xdee   :  { %v1929_v9 = vpop.permute.xlu0 %1928 }
 0xe00   :  { %v1640_v23 = vpop.permute.xlu1 %1639 }
 0xe01   :  { %v1642_v37 = vmul.f32 %v1640_v23, %v1626_v32 }
 0xe04   :  { %v1647_v36 = vpop.permute.xlu1 %1646 }
 0xe05   :  { %v1649_v38 = vmul.f32 %v3432_v6, %v1647_v36 }
 0xe07   :  { %v1650_v4 = vadd.f32 %v1649_v38, %v1642_v37 }
 0xe09   :  { %v3478_v8 = vadd.f32 %v3432_v6, %v1650_v4 }
 0xe0b   :  { %2801 = vmatmul.mubr.msk.f32.vlgmr.msra.gmra.mrb[16].mxu0 %vm44_vm1, %v3478_v8 }
 0xe0c   :  { %2815 = vmatpush3.xpose.msk.msra.mxu0 %vm44_vm1, %v3478_v8  ;;  %2816 = vmatprep.mubr.msk.f32.mxu0 %vm3021_vm0, %v3022_v7 }
 0xe0d   :  { %2916 = vmatprep.subr.bf16.mxu0 %v3020_v3 }
 0xe2e   :  { %v1837_v20 = vpop.trf.xlu1 }
 0xe2f   :  { %2817 = vmatmul.mubr.msk.f32.vlgmr.msra.gmra.mrb[18].mxu0 %vm44_vm1, %v1837_v20 }
 0xe30   :  { %2918 = vmatpush3.bf16.msra.mxu0 %v3335_v25  ;;  %2832 = vmatprep.mubr.msk.f32.mxu0 %vm3021_vm0, %v3022_v7 }
 0xe31   :  { %2919 = vmatprep.subr.bf16.mxu0 %v3020_v3 }
 0xe34   :  { %2921 = vmatpush3.bf16.msra.mxu0 %v3341_v28 }
 0xe35   :  { %2846 = vmatprep.subr.mxu0 %v3022_v7 }
 0xede   :  { %v1732_v11 = vpop.f32.mrb[16].mxu0 }
 0xedf   :  { %v1733_v13 = vadd.f32 %v3288_v15, %v1732_v11  ;;  %v2802_v14 = vpop.f32.mrb[17].mxu0 }
 0xee0   :  { %v1220_v14 = vadd.f32 %v3449_v18, %v3273_v35 }
 0xee1   :  { %2820 = vmatpush3.msra.mxu1 %v1733_v13 }
 0xee2   :  { %2922 = vmatprep.subr.bf16.mxu1 %v3020_v3 }
 0xf02   :  { %v1922_v21 = vpop.f32.mrb[18].mxu0 }
 0xf03   :  { %v1934_v6 = vrot.slane %v1922_v21, %v3183_v34  ;;  %v2818_v25 = vpop.f32.mrb[19].mxu0 }
 0xf05   :  { %v1935_v57 = vadd.f32 %v1934_v6, %v1929_v9 }
 0xf07   :  { %v1942_v28 = vadd.f32 %v2554_v16, %v1935_v57 }
 0xf09   :  { %v1943_v39 = vsel %vm732_vm4, %v1942_v28, -inf }
 0xf0a   :  { %1944 = vmax.xlane.f32.xlu0 %v1943_v39 }
 0xf20   :  { %2028 = vrot.lane.b32.xlu0 %v1814_v24, %s3024_s15 }
 0xf97   :  { %v1945_v15 = vpop.xlane.xlu0 %1944 }
 0xf98   :  { %v1946_v40 = vsub.f32 %v1942_v28, %v1945_v15 }
 0xf9a   :  { %v1947_v41 = vmul.f32 1.442695, %v1946_v40 }
 0xf9b   :  { %v2029_v54 = vpop.permute.xlu0 %2028 }
 0xf9c   :  { %2976 = vpow2.f32 %v1947_v41 }
 0xfa6   :  { %v2977_v59 = vpop.eup %2976 }
 0xfa7   :  { %v1949_v49 = vsel %vm732_vm4, %v2977_v59, 0.0 }
 0xfa8   :  { %1950 = vadd.xlane.f32.xlu1 %v1949_v49 }
0x1035   :  { %v1951_v50 = vpop.xlane.xlu1 %1950 }
0x1036   :  { %2978 = vrcp.f32 %v1951_v50 }
0x1040   :  { %v2979_v26 = vpop.eup %2978 }
0x1041   :  { %v1953_v52 = vmul.f32 %v2979_v26, %v2977_v59 }
0x1043   :  { %2822 = vmatmul.mubr.msk.f32.vlgmr.msra.gmra.mrb[18].mxu1 %vm744_vm5, %v1953_v52 }
0x1044   :  { %2924 = vmatpush3.bf16.msra.mxu1 %v3305_v62  ;;  %2843 = vmatprep.mubr.msk.f32.mxu1 %vm3021_vm0, %v3022_v7 }
0x1045   :  { %2925 = vmatprep.subr.bf16.mxu1 %v3020_v3 }
0x1048   :  { %2927 = vmatpush3.bf16.msra.mxu1 %v3315_v2 }
0x1049   :  { %2851 = vmatprep.subr.mxu1 %v3022_v7 }
0x104b   :  { %2844 = vmatmul.mubr.msk.f32.vlgmr.msra.gmra.mrb[20].mxu1 %vm44_vm1, %v3478_v8 }
0x104c   :  { %2853 = vmatprep.mubr.msk.f32.mxu1 %vm3021_vm0, %v3022_v7 }
0x1116   :  { %v2023_v55 = vpop.f32.mrb[18].mxu1 }
0x1117   :  { %v2031_v56 = vadd.f32 %v2029_v54, %v2023_v55  ;;  %v2823_v58 = vpop.f32.mrb[19].mxu1  ;;  %v2027_v12 = vadd.f32 %v2023_v55, %v3410_v33 }
0x1119   :  { %v2556_v62 = vmul.f32 -1.442695, %v2031_v56 }
0x111b   :  { %2980 = vpow2.f32 %v2556_v62 }
0x111e   :  { %v2214_v22 = vpop.f32.mrb[20].mxu1 }
0x111f   :  { %v2215_v60 = vadd.f32 %v3349_v42, %v2214_v22  ;;  %v2845_v3 = vpop.f32.mrb[21].mxu1 }
0x1121   :  { %2329 = vperm.xlu1 %2946, %v2215_v60  }
0x1125   :  { %v2981_v2 = vpop.eup %2980  ;;  %2947 = vset.pattern.permute.xlu1 %v3025_v47 }
0x1126   :  { %v2035_v61 = vadd.f32 1.0, %v2981_v2 }
0x1128   :  { %2982 = vrcp.f32 %v2035_v61 }
0x1132   :  { %v2983_v63 = vpop.eup %2982 }
0x1133   :  { %2040 = vperm.xlu0 %2945, %v2983_v63   ;;  %v2044_v0 = vsub.f32 1.0, %v2983_v63 }
0x1137   :  { %2047 = vperm.xlu0 %2945, %v2044_v0  }
0x1155   :  { %2222 = vxpose.xlu0.b32.start [1/4] (short) (narrow) %v3359_v44, 8 }
0x1159   :  { %2223 = vxpose.xlu0.b32.cont [2/4] (short) (narrow) %v3365_v45, 8 }
0x115d   :  { %2224 = vxpose.xlu0.b32.cont [3/4] (short) (narrow) %v3371_v46, 8 }
0x1161   :  { %2225 = vxpose.xlu0.b32.end [4/4] (short) (narrow) %v3377_v48, 8 }
0x11a0   :  { %v2330_v27 = vpop.permute.xlu1 %2329 }
0x11b2   :  { %v2041_v42 = vpop.permute.xlu0 %2040 }
0x11b3   :  { %v2043_v5 = vmul.f32 %v2041_v42, %v2027_v12 }
0x11b6   :  { %v2048_v1 = vpop.permute.xlu0 %2047 }
0x11b7   :  { %v2050_v47 = vmul.f32 %v2048_v1, %v3410_v33 }
0x11b9   :  { %v2051_v17 = vadd.f32 %v2050_v47, %v2043_v5 }
0x11bb   :  { %v2052_v51 = vadd.f32 %v2051_v17, %v3410_v33 }
0x11bd   :  { %2833 = vmatmul.mubr.msk.f32.vlgmr.msra.gmra.mrb[20].mxu0 %vm44_vm1, %v2052_v51 }
0x11be   :  { %2847 = vmatpush3.xpose.msk.msra.mxu0 %vm44_vm1, %v2052_v51  ;;  %2848 = vmatprep.mubr.msk.f32.mxu0 %vm3021_vm0, %v3022_v7 }
0x11d5   :  { %v2238_v44 = vpop.trf.xlu0 }
0x11d6   :  { %2849 = vmatmul.mubr.msk.f32.vlgmr.msra.gmra.mrb[22].mxu0 %vm44_vm1, %v2238_v44 }
0x1290   :  { %v2133_v45 = vpop.f32.mrb[20].mxu0 }
0x1291   :  { %v2134_v46 = vadd.f32 %v3399_v19, %v2133_v45  ;;  %v2834_v48 = vpop.f32.mrb[21].mxu0 }
0x1293   :  { %2852 = vmatpush3.msk.msra.mxu1 %vm336_vm2, %v2134_v46 }
0x12a9   :  { %v2323_v10 = vpop.f32.mrb[22].mxu0 }
0x12aa   :  { %v2335_v24 = vrot.slane %v2323_v10, %v3183_v34  ;;  %v2850_v33 = vpop.f32.mrb[23].mxu0 }
0x12ac   :  { %v2336_v53 = vadd.f32 %v2335_v24, %v2330_v27 }
0x12ae   :  { %v2337_v29 = vsel %vm321_vm3, %v2336_v53, -inf }
0x12af   :  { %2338 = vmax.xlane.f32.xlu1 %v2337_v29 }
0x12c0   :  { %1221 = vrot.lane.b32.xlu1 %v3352_v43, %s3024_s15 }
0x12c4   :  { %2425 = vrot.lane.b32.xlu1 %v2215_v60, %s3024_s15  ;;  %s2457_s15 = sshll.u32 %s3026_s2, 4  ;;  %s2458_s15 = int_to_ptr.vmem [resolvable:$true] %s2457_s15 }
0x12c5   :  { %s2996_s9 = scalar_lea.vmem %s2458_s15, 256  ;;  %p3001_p1 = scmp.lt.s32.totalorder %s2458_s15, %s2458_s15 }
0x12c6   :  { %p2997_p0 = scmp.ne.s32.totalorder %s2458_s15, %s2996_s9  ;;  %p3002_p2 = scmp.lt.s32.totalorder %s2996_s9, %s2996_s9 }
0x12c8   :  { %p3003_p3 = por %p3002_p2, %p3001_p1 }
0x12ca   :  { %p3004_p4 = pnand %p3003_p3, %p2997_p0 }
0x133c   :  { %v2339_v7 = vpop.xlane.xlu1 %2338 }
0x133d   :  { %v2340_v30 = vsub.f32 %v2336_v53, %v2339_v7 }
0x133f   :  { %v2341_v19 = vmul.f32 1.442695, %v2340_v30 }
0x1340   :  { %v1222_v31 = vpop.permute.xlu1 %1221 }
0x1341   :  { %2984 = vpow2.f32 %v2341_v19  ;;  %v1224_v23 = vadd.f32 %v1222_v31, %v3449_v18 }
0x1343   :  { %v2522_v32 = vmul.f32 -1.442695, %v1224_v23 }
0x1344   :  { %v2426_v20 = vpop.permute.xlu1 %2425 }
0x1345   :  { %2986 = vpow2.f32 %v2522_v32 }
0x134b   :  { %v2985_v34 = vpop.eup %2984 }
0x134c   :  { %v2343_v36 = vsel %vm321_vm3, %v2985_v34, 0.0 }
0x134d   :  { %2344 = vadd.xlane.f32.xlu0 %v2343_v36 }
0x134f   :  { %v2987_v37 = vpop.eup %2986 }
0x1350   :  { %v1228_v38 = vadd.f32 1.0, %v2987_v37 }
0x1352   :  { %2988 = vrcp.f32 %v1228_v38 }
0x135c   :  { %v2989_v4 = vpop.eup %2988 }
0x135d   :  { %1233 = vperm.xlu1 %2947, %v2989_v4   ;;  %v1237_v43 = vsub.f32 1.0, %v2989_v4 }
0x1361   :  { %1240 = vperm.xlu1 %2947, %v1237_v43  }
0x13da   :  { %v2345_v11 = vpop.xlane.xlu0 %2344 }
0x13db   :  { %2990 = vrcp.f32 %v2345_v11 }
0x13dc   :  { %v1234_v13 = vpop.permute.xlu1 %1233 }
0x13dd   :  { %v1236_v6 = vmul.f32 %v1234_v13, %v1220_v14 }
0x13e0   :  { %v1241_v21 = vpop.permute.xlu1 %1240 }
0x13e1   :  { %v1243_v25 = vmul.f32 %v1241_v21, %v3273_v35 }
0x13e3   :  { %v1244_v9 = vadd.f32 %v1243_v25, %v1236_v6 }
0x13e5   :  { %v2991_v16 = vpop.eup %2990  ;;  %v1245_v57 = vadd.f32 %v1244_v9, %v3273_v35 }
0x13e6   :  { %v2347_v28 = vmul.f32 %v2991_v16, %v2985_v34 }
0x13e7   :  { %1246 = vst.msk [vmem:[#allocation2] sm:$0xff] %vm44_vm1, %v1245_v57 }
0x13e8   :  { %2854 = vmatmul.mubr.msk.f32.vlgmr.msra.gmra.mrb[22].mxu1 %vm321_vm3, %v2347_v28 }
0x14bb   :  { %v2420_v39 = vpop.f32.mrb[22].mxu1 }
0x14bc   :  { %v2428_v15 = vadd.f32 %v2426_v20, %v2420_v39  ;;  %v2855_v40 = vpop.f32.mrb[23].mxu1  ;;  %v2424_v35 = vadd.f32 %v2420_v39, %v3478_v8 }
0x14be   :  { %v2579_v41 = vmul.f32 -1.442695, %v2428_v15 }
0x14c0   :  { %2992 = vpow2.f32 %v2579_v41 }
0x14ca   :  { %v2993_v59 = vpop.eup %2992 }
0x14cb   :  { %v2432_v18 = vadd.f32 1.0, %v2993_v59 }
0x14cd   :  { %2994 = vrcp.f32 %v2432_v18 }
0x14d7   :  { %v2995_v49 = vpop.eup %2994 }
0x14d8   :  { %2437 = vperm.xlu1 %2947, %v2995_v49   ;;  %v2441_v50 = vsub.f32 1.0, %v2995_v49 }
0x14dc   :  { %2444 = vperm.xlu1 %2947, %v2441_v50  }
0x1557   :  { %v2438_v26 = vpop.permute.xlu1 %2437 }
0x1558   :  { %v2440_v54 = vmul.f32 %v2438_v26, %v2424_v35 }
0x155b   :  { %v2445_v52 = vpop.permute.xlu1 %2444 }
0x155c   :  { %v2447_v55 = vmul.f32 %v2445_v52, %v3478_v8 }
0x155e   :  { %v2448_v56 = vadd.f32 %v2447_v55, %v2440_v54 }
0x1560   :  { %v2449_v58 = vadd.f32 %v2448_v56, %v3478_v8 }
0x1562   :  { %2451 = vst.msk [vmem:[#allocation2 + $0x8] sm:$0xff] %vm44_vm1, %v2449_v58 }
0x1563   :  { %3007 = shalt.err (!%p3004_p4)
}
0x1564   :  { %s3008_s11 = scalar_lea.hbm %s3567_s8, 256 }
0x1565   :  { %p3009_p5 = scmp.ne.s32.totalorder %s3567_s8, %s3008_s11  ;;  %p3012_p6 = scmp.lt.u32.totalorder %s3008_s11, %s3567_s8 }
0x1567   :  { %p3014_p7 = pnand %p3012_p6, %p3009_p5 }
0x1569   :  { %3017 = shalt.err (!%p3014_p7)
}
0x156a   :  { %s3027_s17 = smov 128   ;;  %s3028_s18 = smov 8  }
0x156b   :  { %2463 = dma.vmem_to_hbm [thread:$0]  %s2458_s15, 256, %s3567_s8, [#allocation3], %s3027_s17, %s3027_s17, %s3028_s18  }
0x156c   :  { %3018 = dma.done.wait [#allocation3], 256  }
0x156d   :  { %3019 = vsyncadd [#allocation3], 4294967040 }
0x156e   :  { %2467 = vsyncpa [#allocation3], 1 }

</bundles_post_ra>
